<compile_context>
chip_gen: v6e
topology: v6e:2x2x1
jax: 0.10.0
libtpu: 0.0.40
codegen_flags: <defaults>
</compile_context>

<pallas_src>
import functools

import jax
import jax.numpy as jnp
from jax.experimental import pallas as pl
from jax.experimental.pallas import tpu as pltpu


def _decision_kernel(x_ref, w1_ref, scale1_ref, bias1_ref, w2_ref, b2_ref,
                     out_ref, ypad_ref, *, cin, cmid, h, w):
    """One grid step == one image.

    x_ref   : (1, cin, h+4, w+4) VMEM  -- input padded by 2 on each spatial side
    w1_ref  : (cmid*cin*9,)      SMEM  -- conv1 weights (flat, OIHW order)
    scale1_ref, bias1_ref : (cmid,) SMEM -- folded BN(+conv1 bias) affine
    w2_ref  : (cmid*9,)          SMEM  -- conv2 weights (flat)
    b2_ref  : (1,)               SMEM  -- conv2 bias
    out_ref : (1, 1, h, w)       VMEM
    ypad_ref: (cmid, h+2, w+2)   VMEM scratch -- zero-padded intermediate y
    """
    hp, wp = h + 2, w + 2  # conv1 output extent including conv2's halo

    # ---- conv1 (+ folded BN affine + ReLU) on the (h+2, w+2) extended grid ----
    acc = [jnp.zeros((hp, wp), jnp.float32) for _ in range(cmid)]
    for ic in range(cin):
        for dy in range(3):
            for dx in range(3):
                # Static-offset window load; reused for every output channel.
                slab = x_ref[0, ic, pl.ds(dy, hp), pl.ds(dx, wp)]
                for oc in range(cmid):
                    wgt = w1_ref[((oc * cin + ic) * 3 + dy) * 3 + dx]
                    acc[oc] = acc[oc] + wgt * slab

    # Interior mask: rows/cols 1..h(w) hold the true conv1 output; the outer
    # ring becomes conv2's zero padding.
    row = jax.lax.broadcasted_iota(jnp.int32, (hp, wp), 0)
    col = jax.lax.broadcasted_iota(jnp.int32, (hp, wp), 1)
    interior = (row >= 1) & (row <= h) & (col >= 1) & (col <= w)

    for oc in range(cmid):
        y = jnp.maximum(scale1_ref[oc] * acc[oc] + bias1_ref[oc], 0.0)
        ypad_ref[oc, :, :] = jnp.where(interior, y, 0.0)  # full, aligned store

    # ---- conv2 + bias + sigmoid on the (h, w) grid ----
    out = jnp.zeros((h, w), jnp.float32)
    for ic in range(cmid):
        for dy in range(3):
            for dx in range(3):
                slab = ypad_ref[ic, pl.ds(dy, h), pl.ds(dx, w)]
                wgt = w2_ref[(ic * 3 + dy) * 3 + dx]
                out = out + wgt * slab
    z = out + b2_ref[0]
    out_ref[0, 0, :, :] = 1.0 / (1.0 + jnp.exp(-z))


def decision_forward(x, w1, b1, gamma, beta, running_mean, running_var, w2, b2,
                     *, eps=1e-5):
    """Pallas implementation of Decision.forward (eval-mode BatchNorm)."""
    B, cin, H, W = x.shape
    cmid = w1.shape[0]
    assert w1.shape == (cmid, cin, 3, 3)
    assert w2.shape == (1, cmid, 3, 3)

    # Halo pad by 2 (conv1 is evaluated on an (H+2, W+2) grid so conv2's halo
    # comes for free).  Tiny copy; negligible next to the kernel itself.
    x_pad = jnp.pad(x.astype(jnp.float32), ((0, 0), (0, 0), (2, 2), (2, 2)))

    # Fold conv1 bias + eval-mode BatchNorm into a per-channel affine.
    scale1 = (gamma / jnp.sqrt(running_var + eps)).astype(jnp.float32)
    bias1 = (beta + scale1 * (b1 - running_mean)).astype(jnp.float32)

    w1_flat = w1.astype(jnp.float32).reshape(-1)
    w2_flat = w2.astype(jnp.float32).reshape(-1)
    b2_flat = b2.astype(jnp.float32).reshape(-1)

    kernel = functools.partial(_decision_kernel, cin=cin, cmid=cmid, h=H, w=W)

    smem_spec = pl.BlockSpec(memory_space=pltpu.MemorySpace.SMEM)

    out = pl.pallas_call(
        kernel,
        out_shape=jax.ShapeDtypeStruct((B, 1, H, W), jnp.float32),
        grid_spec=pltpu.PrefetchScalarGridSpec(
            num_scalar_prefetch=0,
            grid=(B,),
            in_specs=[
                pl.BlockSpec((1, cin, H + 4, W + 4), lambda b: (b, 0, 0, 0)),
                smem_spec,   # w1
                smem_spec,   # scale1
                smem_spec,   # bias1
                smem_spec,   # w2
                smem_spec,   # b2
            ],
            out_specs=pl.BlockSpec((1, 1, H, W), lambda b: (b, 0, 0, 0)),
            scratch_shapes=[pltpu.VMEM((cmid, H + 2, W + 2), jnp.float32)],
        ),
        compiler_params=pltpu.CompilerParams(
            # Batch axis is independent -> shard across the 2 TCs on v7x.
            dimension_semantics=("parallel",),
        ),
    )(x_pad, w1_flat, scale1, bias1, w2_flat, b2_flat)
    return out


def _reference_decision(x, w1, b1, gamma, beta, running_mean, running_var,
                        w2, b2, eps=1e-5):
    """Pure-JAX reference matching the PyTorch module (eval-mode BN)."""
    dn = ("NCHW", "OIHW", "NCHW")
    y = jax.lax.conv_general_dilated(x, w1, (1, 1), ((1, 1), (1, 1)),
                                     dimension_numbers=dn)
    y = y + b1[None, :, None, None]
    y = (gamma[None, :, None, None] * (y - running_mean[None, :, None, None])
         / jnp.sqrt(running_var[None, :, None, None] + eps)
         + beta[None, :, None, None])
    y = jnp.maximum(y, 0.0)
    z = jax.lax.conv_general_dilated(y, w2, (1, 1), ((1, 1), (1, 1)),
                                     dimension_numbers=dn)
    z = z + b2[None, :, None, None]
    return jax.nn.sigmoid(z)


if __name__ == "__main__":
    key = jax.random.PRNGKey(0)
    ks = jax.random.split(key, 9)

    B, CIN, H, W = 2, 4, 16, 16
    CMID = 2

    x = jax.random.normal(ks[0], (B, CIN, H, W), jnp.float32)
    w1 = 0.3 * jax.random.normal(ks[1], (CMID, CIN, 3, 3), jnp.float32)
    b1 = 0.1 * jax.random.normal(ks[2], (CMID,), jnp.float32)
    gamma = 1.0 + 0.1 * jax.random.normal(ks[3], (CMID,), jnp.float32)
    beta = 0.1 * jax.random.normal(ks[4], (CMID,), jnp.float32)
    running_mean = 0.1 * jax.random.normal(ks[5], (CMID,), jnp.float32)
    running_var = jax.random.uniform(ks[6], (CMID,), jnp.float32, 0.5, 1.5)
    w2 = 0.3 * jax.random.normal(ks[7], (1, CMID, 3, 3), jnp.float32)
    b2 = 0.1 * jax.random.normal(ks[8], (1,), jnp.float32)

    out = decision_forward(x, w1, b1, gamma, beta, running_mean, running_var,
                           w2, b2)
    out = jax.block_until_ready(out)

    ref = _reference_decision(x, w1, b1, gamma, beta, running_mean, running_var,
                              w2, b2)
    assert out.shape == (B, 1, H, W)
    assert jnp.allclose(out, ref, rtol=1e-5, atol=1e-5), (
        float(jnp.max(jnp.abs(out - ref))))

    print("KERNEL_OK")
</pallas_src>

<mosaic_0001>
module attributes {stable_mosaic.version = 11 : i64} {
  func.func @_decision_kernel(%arg0: i32, %arg1: memref<1x4x20x20xf32, #tpu.memory_space<vmem>>, %arg2: memref<72xf32, #tpu.memory_space<smem>>, %arg3: memref<2xf32, #tpu.memory_space<smem>>, %arg4: memref<2xf32, #tpu.memory_space<smem>>, %arg5: memref<18xf32, #tpu.memory_space<smem>>, %arg6: memref<1xf32, #tpu.memory_space<smem>>, %arg7: memref<1x1x16x16xf32, #tpu.memory_space<vmem>>, %arg8: memref<2x18x18xf32, #tpu.memory_space<vmem>>) attributes {dimension_semantics = [#tpu.dimension_semantics<parallel>], iteration_bounds = array<i64: 2>, scalar_prefetch = 0 : i64, scratch_operands = 1 : i64, tpu.core_type = #tpu.core_type<tc>, window_params = [{transform_indices = @transform_0, window_bounds = array<i64: 1, 4, 20, 20>}, {transform_indices = @transform_1, window_bounds = array<i64: 72>}, {transform_indices = @transform_2, window_bounds = array<i64: 2>}, {transform_indices = @transform_3, window_bounds = array<i64: 2>}, {transform_indices = @transform_4, window_bounds = array<i64: 18>}, {transform_indices = @transform_5, window_bounds = array<i64: 1>}, {transform_indices = @transform_6, window_bounds = array<i64: 1, 1, 16, 16>}]} {
    %cst = arith.constant 0.000000e+00 : f32
    %0 = vector.broadcast %cst : f32 to vector<18x18xf32>
    %cst_0 = arith.constant 0.000000e+00 : f32
    %1 = vector.broadcast %cst_0 : f32 to vector<18x18xf32>
    %c0 = arith.constant 0 : index
    %c0_1 = arith.constant 0 : index
    %c0_2 = arith.constant 0 : index
    %c0_3 = arith.constant 0 : index
    %2 = vector.load %arg1[%c0, %c0_1, %c0_2, %c0_3] : memref<1x4x20x20xf32, #tpu.memory_space<vmem>>, vector<1x1x18x18xf32>
    %3 = vector.shape_cast %2 : vector<1x1x18x18xf32> to vector<18x18xf32>
    %c0_4 = arith.constant 0 : index
    %4 = memref.load %arg2[%c0_4] : memref<72xf32, #tpu.memory_space<smem>>
    %5 = vector.broadcast %4 : f32 to vector<18x18xf32>
    %6 = arith.mulf %5, %3 : vector<18x18xf32>
    %7 = arith.addf %0, %6 : vector<18x18xf32>
    %c36 = arith.constant 36 : index
    %8 = memref.load %arg2[%c36] : memref<72xf32, #tpu.memory_space<smem>>
    %9 = vector.broadcast %8 : f32 to vector<18x18xf32>
    %10 = arith.mulf %9, %3 : vector<18x18xf32>
    %11 = arith.addf %1, %10 : vector<18x18xf32>
    %c0_5 = arith.constant 0 : index
    %c0_6 = arith.constant 0 : index
    %c0_7 = arith.constant 0 : index
    %c1 = arith.constant 1 : index
    %12 = vector.load %arg1[%c0_5, %c0_6, %c0_7, %c1] : memref<1x4x20x20xf32, #tpu.memory_space<vmem>>, vector<1x1x18x18xf32>
    %13 = vector.shape_cast %12 : vector<1x1x18x18xf32> to vector<18x18xf32>
    %c1_8 = arith.constant 1 : index
    %14 = memref.load %arg2[%c1_8] : memref<72xf32, #tpu.memory_space<smem>>
    %15 = vector.broadcast %14 : f32 to vector<18x18xf32>
    %16 = arith.mulf %15, %13 : vector<18x18xf32>
    %17 = arith.addf %7, %16 : vector<18x18xf32>
    %c37 = arith.constant 37 : index
    %18 = memref.load %arg2[%c37] : memref<72xf32, #tpu.memory_space<smem>>
    %19 = vector.broadcast %18 : f32 to vector<18x18xf32>
    %20 = arith.mulf %19, %13 : vector<18x18xf32>
    %21 = arith.addf %11, %20 : vector<18x18xf32>
    %c0_9 = arith.constant 0 : index
    %c0_10 = arith.constant 0 : index
    %c0_11 = arith.constant 0 : index
    %c2 = arith.constant 2 : index
    %22 = vector.load %arg1[%c0_9, %c0_10, %c0_11, %c2] : memref<1x4x20x20xf32, #tpu.memory_space<vmem>>, vector<1x1x18x18xf32>
    %23 = vector.shape_cast %22 : vector<1x1x18x18xf32> to vector<18x18xf32>
    %c2_12 = arith.constant 2 : index
    %24 = memref.load %arg2[%c2_12] : memref<72xf32, #tpu.memory_space<smem>>
    %25 = vector.broadcast %24 : f32 to vector<18x18xf32>
    %26 = arith.mulf %25, %23 : vector<18x18xf32>
    %27 = arith.addf %17, %26 : vector<18x18xf32>
    %c38 = arith.constant 38 : index
    %28 = memref.load %arg2[%c38] : memref<72xf32, #tpu.memory_space<smem>>
    %29 = vector.broadcast %28 : f32 to vector<18x18xf32>
    %30 = arith.mulf %29, %23 : vector<18x18xf32>
    %31 = arith.addf %21, %30 : vector<18x18xf32>
    %c0_13 = arith.constant 0 : index
    %c0_14 = arith.constant 0 : index
    %c1_15 = arith.constant 1 : index
    %c0_16 = arith.constant 0 : index
    %32 = vector.load %arg1[%c0_13, %c0_14, %c1_15, %c0_16] : memref<1x4x20x20xf32, #tpu.memory_space<vmem>>, vector<1x1x18x18xf32>
    %33 = vector.shape_cast %32 : vector<1x1x18x18xf32> to vector<18x18xf32>
    %c3 = arith.constant 3 : index
    %34 = memref.load %arg2[%c3] : memref<72xf32, #tpu.memory_space<smem>>
    %35 = vector.broadcast %34 : f32 to vector<18x18xf32>
    %36 = arith.mulf %35, %33 : vector<18x18xf32>
    %37 = arith.addf %27, %36 : vector<18x18xf32>
    %c39 = arith.constant 39 : index
    %38 = memref.load %arg2[%c39] : memref<72xf32, #tpu.memory_space<smem>>
    %39 = vector.broadcast %38 : f32 to vector<18x18xf32>
    %40 = arith.mulf %39, %33 : vector<18x18xf32>
    %41 = arith.addf %31, %40 : vector<18x18xf32>
    %c0_17 = arith.constant 0 : index
    %c0_18 = arith.constant 0 : index
    %c1_19 = arith.constant 1 : index
    %c1_20 = arith.constant 1 : index
    %42 = vector.load %arg1[%c0_17, %c0_18, %c1_19, %c1_20] : memref<1x4x20x20xf32, #tpu.memory_space<vmem>>, vector<1x1x18x18xf32>
    %43 = vector.shape_cast %42 : vector<1x1x18x18xf32> to vector<18x18xf32>
    %c4 = arith.constant 4 : index
    %44 = memref.load %arg2[%c4] : memref<72xf32, #tpu.memory_space<smem>>
    %45 = vector.broadcast %44 : f32 to vector<18x18xf32>
    %46 = arith.mulf %45, %43 : vector<18x18xf32>
    %47 = arith.addf %37, %46 : vector<18x18xf32>
    %c40 = arith.constant 40 : index
    %48 = memref.load %arg2[%c40] : memref<72xf32, #tpu.memory_space<smem>>
    %49 = vector.broadcast %48 : f32 to vector<18x18xf32>
    %50 = arith.mulf %49, %43 : vector<18x18xf32>
    %51 = arith.addf %41, %50 : vector<18x18xf32>
    %c0_21 = arith.constant 0 : index
    %c0_22 = arith.constant 0 : index
    %c1_23 = arith.constant 1 : index
    %c2_24 = arith.constant 2 : index
    %52 = vector.load %arg1[%c0_21, %c0_22, %c1_23, %c2_24] : memref<1x4x20x20xf32, #tpu.memory_space<vmem>>, vector<1x1x18x18xf32>
    %53 = vector.shape_cast %52 : vector<1x1x18x18xf32> to vector<18x18xf32>
    %c5 = arith.constant 5 : index
    %54 = memref.load %arg2[%c5] : memref<72xf32, #tpu.memory_space<smem>>
    %55 = vector.broadcast %54 : f32 to vector<18x18xf32>
    %56 = arith.mulf %55, %53 : vector<18x18xf32>
    %57 = arith.addf %47, %56 : vector<18x18xf32>
    %c41 = arith.constant 41 : index
    %58 = memref.load %arg2[%c41] : memref<72xf32, #tpu.memory_space<smem>>
    %59 = vector.broadcast %58 : f32 to vector<18x18xf32>
    %60 = arith.mulf %59, %53 : vector<18x18xf32>
    %61 = arith.addf %51, %60 : vector<18x18xf32>
    %c0_25 = arith.constant 0 : index
    %c0_26 = arith.constant 0 : index
    %c2_27 = arith.constant 2 : index
    %c0_28 = arith.constant 0 : index
    %62 = vector.load %arg1[%c0_25, %c0_26, %c2_27, %c0_28] : memref<1x4x20x20xf32, #tpu.memory_space<vmem>>, vector<1x1x18x18xf32>
    %63 = vector.shape_cast %62 : vector<1x1x18x18xf32> to vector<18x18xf32>
    %c6 = arith.constant 6 : index
    %64 = memref.load %arg2[%c6] : memref<72xf32, #tpu.memory_space<smem>>
    %65 = vector.broadcast %64 : f32 to vector<18x18xf32>
    %66 = arith.mulf %65, %63 : vector<18x18xf32>
    %67 = arith.addf %57, %66 : vector<18x18xf32>
    %c42 = arith.constant 42 : index
    %68 = memref.load %arg2[%c42] : memref<72xf32, #tpu.memory_space<smem>>
    %69 = vector.broadcast %68 : f32 to vector<18x18xf32>
    %70 = arith.mulf %69, %63 : vector<18x18xf32>
    %71 = arith.addf %61, %70 : vector<18x18xf32>
    %c0_29 = arith.constant 0 : index
    %c0_30 = arith.constant 0 : index
    %c2_31 = arith.constant 2 : index
    %c1_32 = arith.constant 1 : index
    %72 = vector.load %arg1[%c0_29, %c0_30, %c2_31, %c1_32] : memref<1x4x20x20xf32, #tpu.memory_space<vmem>>, vector<1x1x18x18xf32>
    %73 = vector.shape_cast %72 : vector<1x1x18x18xf32> to vector<18x18xf32>
    %c7 = arith.constant 7 : index
    %74 = memref.load %arg2[%c7] : memref<72xf32, #tpu.memory_space<smem>>
    %75 = vector.broadcast %74 : f32 to vector<18x18xf32>
    %76 = arith.mulf %75, %73 : vector<18x18xf32>
    %77 = arith.addf %67, %76 : vector<18x18xf32>
    %c43 = arith.constant 43 : index
    %78 = memref.load %arg2[%c43] : memref<72xf32, #tpu.memory_space<smem>>
    %79 = vector.broadcast %78 : f32 to vector<18x18xf32>
    %80 = arith.mulf %79, %73 : vector<18x18xf32>
    %81 = arith.addf %71, %80 : vector<18x18xf32>
    %c0_33 = arith.constant 0 : index
    %c0_34 = arith.constant 0 : index
    %c2_35 = arith.constant 2 : index
    %c2_36 = arith.constant 2 : index
    %82 = vector.load %arg1[%c0_33, %c0_34, %c2_35, %c2_36] : memref<1x4x20x20xf32, #tpu.memory_space<vmem>>, vector<1x1x18x18xf32>
    %83 = vector.shape_cast %82 : vector<1x1x18x18xf32> to vector<18x18xf32>
    %c8 = arith.constant 8 : index
    %84 = memref.load %arg2[%c8] : memref<72xf32, #tpu.memory_space<smem>>
    %85 = vector.broadcast %84 : f32 to vector<18x18xf32>
    %86 = arith.mulf %85, %83 : vector<18x18xf32>
    %87 = arith.addf %77, %86 : vector<18x18xf32>
    %c44 = arith.constant 44 : index
    %88 = memref.load %arg2[%c44] : memref<72xf32, #tpu.memory_space<smem>>
    %89 = vector.broadcast %88 : f32 to vector<18x18xf32>
    %90 = arith.mulf %89, %83 : vector<18x18xf32>
    %91 = arith.addf %81, %90 : vector<18x18xf32>
    %c0_37 = arith.constant 0 : index
    %c1_38 = arith.constant 1 : index
    %c0_39 = arith.constant 0 : index
    %c0_40 = arith.constant 0 : index
    %92 = vector.load %arg1[%c0_37, %c1_38, %c0_39, %c0_40] : memref<1x4x20x20xf32, #tpu.memory_space<vmem>>, vector<1x1x18x18xf32>
    %93 = vector.shape_cast %92 : vector<1x1x18x18xf32> to vector<18x18xf32>
    %c9 = arith.constant 9 : index
    %94 = memref.load %arg2[%c9] : memref<72xf32, #tpu.memory_space<smem>>
    %95 = vector.broadcast %94 : f32 to vector<18x18xf32>
    %96 = arith.mulf %95, %93 : vector<18x18xf32>
    %97 = arith.addf %87, %96 : vector<18x18xf32>
    %c45 = arith.constant 45 : index
    %98 = memref.load %arg2[%c45] : memref<72xf32, #tpu.memory_space<smem>>
    %99 = vector.broadcast %98 : f32 to vector<18x18xf32>
    %100 = arith.mulf %99, %93 : vector<18x18xf32>
    %101 = arith.addf %91, %100 : vector<18x18xf32>
    %c0_41 = arith.constant 0 : index
    %c1_42 = arith.constant 1 : index
    %c0_43 = arith.constant 0 : index
    %c1_44 = arith.constant 1 : index
    %102 = vector.load %arg1[%c0_41, %c1_42, %c0_43, %c1_44] : memref<1x4x20x20xf32, #tpu.memory_space<vmem>>, vector<1x1x18x18xf32>
    %103 = vector.shape_cast %102 : vector<1x1x18x18xf32> to vector<18x18xf32>
    %c10 = arith.constant 10 : index
    %104 = memref.load %arg2[%c10] : memref<72xf32, #tpu.memory_space<smem>>
    %105 = vector.broadcast %104 : f32 to vector<18x18xf32>
    %106 = arith.mulf %105, %103 : vector<18x18xf32>
    %107 = arith.addf %97, %106 : vector<18x18xf32>
    %c46 = arith.constant 46 : index
    %108 = memref.load %arg2[%c46] : memref<72xf32, #tpu.memory_space<smem>>
    %109 = vector.broadcast %108 : f32 to vector<18x18xf32>
    %110 = arith.mulf %109, %103 : vector<18x18xf32>
    %111 = arith.addf %101, %110 : vector<18x18xf32>
    %c0_45 = arith.constant 0 : index
    %c1_46 = arith.constant 1 : index
    %c0_47 = arith.constant 0 : index
    %c2_48 = arith.constant 2 : index
    %112 = vector.load %arg1[%c0_45, %c1_46, %c0_47, %c2_48] : memref<1x4x20x20xf32, #tpu.memory_space<vmem>>, vector<1x1x18x18xf32>
    %113 = vector.shape_cast %112 : vector<1x1x18x18xf32> to vector<18x18xf32>
    %c11 = arith.constant 11 : index
    %114 = memref.load %arg2[%c11] : memref<72xf32, #tpu.memory_space<smem>>
    %115 = vector.broadcast %114 : f32 to vector<18x18xf32>
    %116 = arith.mulf %115, %113 : vector<18x18xf32>
    %117 = arith.addf %107, %116 : vector<18x18xf32>
    %c47 = arith.constant 47 : index
    %118 = memref.load %arg2[%c47] : memref<72xf32, #tpu.memory_space<smem>>
    %119 = vector.broadcast %118 : f32 to vector<18x18xf32>
    %120 = arith.mulf %119, %113 : vector<18x18xf32>
    %121 = arith.addf %111, %120 : vector<18x18xf32>
    %c0_49 = arith.constant 0 : index
    %c1_50 = arith.constant 1 : index
    %c1_51 = arith.constant 1 : index
    %c0_52 = arith.constant 0 : index
    %122 = vector.load %arg1[%c0_49, %c1_50, %c1_51, %c0_52] : memref<1x4x20x20xf32, #tpu.memory_space<vmem>>, vector<1x1x18x18xf32>
    %123 = vector.shape_cast %122 : vector<1x1x18x18xf32> to vector<18x18xf32>
    %c12 = arith.constant 12 : index
    %124 = memref.load %arg2[%c12] : memref<72xf32, #tpu.memory_space<smem>>
    %125 = vector.broadcast %124 : f32 to vector<18x18xf32>
    %126 = arith.mulf %125, %123 : vector<18x18xf32>
    %127 = arith.addf %117, %126 : vector<18x18xf32>
    %c48 = arith.constant 48 : index
    %128 = memref.load %arg2[%c48] : memref<72xf32, #tpu.memory_space<smem>>
    %129 = vector.broadcast %128 : f32 to vector<18x18xf32>
    %130 = arith.mulf %129, %123 : vector<18x18xf32>
    %131 = arith.addf %121, %130 : vector<18x18xf32>
    %c0_53 = arith.constant 0 : index
    %c1_54 = arith.constant 1 : index
    %c1_55 = arith.constant 1 : index
    %c1_56 = arith.constant 1 : index
    %132 = vector.load %arg1[%c0_53, %c1_54, %c1_55, %c1_56] : memref<1x4x20x20xf32, #tpu.memory_space<vmem>>, vector<1x1x18x18xf32>
    %133 = vector.shape_cast %132 : vector<1x1x18x18xf32> to vector<18x18xf32>
    %c13 = arith.constant 13 : index
    %134 = memref.load %arg2[%c13] : memref<72xf32, #tpu.memory_space<smem>>
    %135 = vector.broadcast %134 : f32 to vector<18x18xf32>
    %136 = arith.mulf %135, %133 : vector<18x18xf32>
    %137 = arith.addf %127, %136 : vector<18x18xf32>
    %c49 = arith.constant 49 : index
    %138 = memref.load %arg2[%c49] : memref<72xf32, #tpu.memory_space<smem>>
    %139 = vector.broadcast %138 : f32 to vector<18x18xf32>
    %140 = arith.mulf %139, %133 : vector<18x18xf32>
    %141 = arith.addf %131, %140 : vector<18x18xf32>
    %c0_57 = arith.constant 0 : index
    %c1_58 = arith.constant 1 : index
    %c1_59 = arith.constant 1 : index
    %c2_60 = arith.constant 2 : index
    %142 = vector.load %arg1[%c0_57, %c1_58, %c1_59, %c2_60] : memref<1x4x20x20xf32, #tpu.memory_space<vmem>>, vector<1x1x18x18xf32>
    %143 = vector.shape_cast %142 : vector<1x1x18x18xf32> to vector<18x18xf32>
    %c14 = arith.constant 14 : index
    %144 = memref.load %arg2[%c14] : memref<72xf32, #tpu.memory_space<smem>>
    %145 = vector.broadcast %144 : f32 to vector<18x18xf32>
    %146 = arith.mulf %145, %143 : vector<18x18xf32>
    %147 = arith.addf %137, %146 : vector<18x18xf32>
    %c50 = arith.constant 50 : index
    %148 = memref.load %arg2[%c50] : memref<72xf32, #tpu.memory_space<smem>>
    %149 = vector.broadcast %148 : f32 to vector<18x18xf32>
    %150 = arith.mulf %149, %143 : vector<18x18xf32>
    %151 = arith.addf %141, %150 : vector<18x18xf32>
    %c0_61 = arith.constant 0 : index
    %c1_62 = arith.constant 1 : index
    %c2_63 = arith.constant 2 : index
    %c0_64 = arith.constant 0 : index
    %152 = vector.load %arg1[%c0_61, %c1_62, %c2_63, %c0_64] : memref<1x4x20x20xf32, #tpu.memory_space<vmem>>, vector<1x1x18x18xf32>
    %153 = vector.shape_cast %152 : vector<1x1x18x18xf32> to vector<18x18xf32>
    %c15 = arith.constant 15 : index
    %154 = memref.load %arg2[%c15] : memref<72xf32, #tpu.memory_space<smem>>
    %155 = vector.broadcast %154 : f32 to vector<18x18xf32>
    %156 = arith.mulf %155, %153 : vector<18x18xf32>
    %157 = arith.addf %147, %156 : vector<18x18xf32>
    %c51 = arith.constant 51 : index
    %158 = memref.load %arg2[%c51] : memref<72xf32, #tpu.memory_space<smem>>
    %159 = vector.broadcast %158 : f32 to vector<18x18xf32>
    %160 = arith.mulf %159, %153 : vector<18x18xf32>
    %161 = arith.addf %151, %160 : vector<18x18xf32>
    %c0_65 = arith.constant 0 : index
    %c1_66 = arith.constant 1 : index
    %c2_67 = arith.constant 2 : index
    %c1_68 = arith.constant 1 : index
    %162 = vector.load %arg1[%c0_65, %c1_66, %c2_67, %c1_68] : memref<1x4x20x20xf32, #tpu.memory_space<vmem>>, vector<1x1x18x18xf32>
    %163 = vector.shape_cast %162 : vector<1x1x18x18xf32> to vector<18x18xf32>
    %c16 = arith.constant 16 : index
    %164 = memref.load %arg2[%c16] : memref<72xf32, #tpu.memory_space<smem>>
    %165 = vector.broadcast %164 : f32 to vector<18x18xf32>
    %166 = arith.mulf %165, %163 : vector<18x18xf32>
    %167 = arith.addf %157, %166 : vector<18x18xf32>
    %c52 = arith.constant 52 : index
    %168 = memref.load %arg2[%c52] : memref<72xf32, #tpu.memory_space<smem>>
    %169 = vector.broadcast %168 : f32 to vector<18x18xf32>
    %170 = arith.mulf %169, %163 : vector<18x18xf32>
    %171 = arith.addf %161, %170 : vector<18x18xf32>
    %c0_69 = arith.constant 0 : index
    %c1_70 = arith.constant 1 : index
    %c2_71 = arith.constant 2 : index
    %c2_72 = arith.constant 2 : index
    %172 = vector.load %arg1[%c0_69, %c1_70, %c2_71, %c2_72] : memref<1x4x20x20xf32, #tpu.memory_space<vmem>>, vector<1x1x18x18xf32>
    %173 = vector.shape_cast %172 : vector<1x1x18x18xf32> to vector<18x18xf32>
    %c17 = arith.constant 17 : index
    %174 = memref.load %arg2[%c17] : memref<72xf32, #tpu.memory_space<smem>>
    %175 = vector.broadcast %174 : f32 to vector<18x18xf32>
    %176 = arith.mulf %175, %173 : vector<18x18xf32>
    %177 = arith.addf %167, %176 : vector<18x18xf32>
    %c53 = arith.constant 53 : index
    %178 = memref.load %arg2[%c53] : memref<72xf32, #tpu.memory_space<smem>>
    %179 = vector.broadcast %178 : f32 to vector<18x18xf32>
    %180 = arith.mulf %179, %173 : vector<18x18xf32>
    %181 = arith.addf %171, %180 : vector<18x18xf32>
    %c0_73 = arith.constant 0 : index
    %c2_74 = arith.constant 2 : index
    %c0_75 = arith.constant 0 : index
    %c0_76 = arith.constant 0 : index
    %182 = vector.load %arg1[%c0_73, %c2_74, %c0_75, %c0_76] : memref<1x4x20x20xf32, #tpu.memory_space<vmem>>, vector<1x1x18x18xf32>
    %183 = vector.shape_cast %182 : vector<1x1x18x18xf32> to vector<18x18xf32>
    %c18 = arith.constant 18 : index
    %184 = memref.load %arg2[%c18] : memref<72xf32, #tpu.memory_space<smem>>
    %185 = vector.broadcast %184 : f32 to vector<18x18xf32>
    %186 = arith.mulf %185, %183 : vector<18x18xf32>
    %187 = arith.addf %177, %186 : vector<18x18xf32>
    %c54 = arith.constant 54 : index
    %188 = memref.load %arg2[%c54] : memref<72xf32, #tpu.memory_space<smem>>
    %189 = vector.broadcast %188 : f32 to vector<18x18xf32>
    %190 = arith.mulf %189, %183 : vector<18x18xf32>
    %191 = arith.addf %181, %190 : vector<18x18xf32>
    %c0_77 = arith.constant 0 : index
    %c2_78 = arith.constant 2 : index
    %c0_79 = arith.constant 0 : index
    %c1_80 = arith.constant 1 : index
    %192 = vector.load %arg1[%c0_77, %c2_78, %c0_79, %c1_80] : memref<1x4x20x20xf32, #tpu.memory_space<vmem>>, vector<1x1x18x18xf32>
    %193 = vector.shape_cast %192 : vector<1x1x18x18xf32> to vector<18x18xf32>
    %c19 = arith.constant 19 : index
    %194 = memref.load %arg2[%c19] : memref<72xf32, #tpu.memory_space<smem>>
    %195 = vector.broadcast %194 : f32 to vector<18x18xf32>
    %196 = arith.mulf %195, %193 : vector<18x18xf32>
    %197 = arith.addf %187, %196 : vector<18x18xf32>
    %c55 = arith.constant 55 : index
    %198 = memref.load %arg2[%c55] : memref<72xf32, #tpu.memory_space<smem>>
    %199 = vector.broadcast %198 : f32 to vector<18x18xf32>
    %200 = arith.mulf %199, %193 : vector<18x18xf32>
    %201 = arith.addf %191, %200 : vector<18x18xf32>
    %c0_81 = arith.constant 0 : index
    %c2_82 = arith.constant 2 : index
    %c0_83 = arith.constant 0 : index
    %c2_84 = arith.constant 2 : index
    %202 = vector.load %arg1[%c0_81, %c2_82, %c0_83, %c2_84] : memref<1x4x20x20xf32, #tpu.memory_space<vmem>>, vector<1x1x18x18xf32>
    %203 = vector.shape_cast %202 : vector<1x1x18x18xf32> to vector<18x18xf32>
    %c20 = arith.constant 20 : index
    %204 = memref.load %arg2[%c20] : memref<72xf32, #tpu.memory_space<smem>>
    %205 = vector.broadcast %204 : f32 to vector<18x18xf32>
    %206 = arith.mulf %205, %203 : vector<18x18xf32>
    %207 = arith.addf %197, %206 : vector<18x18xf32>
    %c56 = arith.constant 56 : index
    %208 = memref.load %arg2[%c56] : memref<72xf32, #tpu.memory_space<smem>>
    %209 = vector.broadcast %208 : f32 to vector<18x18xf32>
    %210 = arith.mulf %209, %203 : vector<18x18xf32>
    %211 = arith.addf %201, %210 : vector<18x18xf32>
    %c0_85 = arith.constant 0 : index
    %c2_86 = arith.constant 2 : index
    %c1_87 = arith.constant 1 : index
    %c0_88 = arith.constant 0 : index
    %212 = vector.load %arg1[%c0_85, %c2_86, %c1_87, %c0_88] : memref<1x4x20x20xf32, #tpu.memory_space<vmem>>, vector<1x1x18x18xf32>
    %213 = vector.shape_cast %212 : vector<1x1x18x18xf32> to vector<18x18xf32>
    %c21 = arith.constant 21 : index
    %214 = memref.load %arg2[%c21] : memref<72xf32, #tpu.memory_space<smem>>
    %215 = vector.broadcast %214 : f32 to vector<18x18xf32>
    %216 = arith.mulf %215, %213 : vector<18x18xf32>
    %217 = arith.addf %207, %216 : vector<18x18xf32>
    %c57 = arith.constant 57 : index
    %218 = memref.load %arg2[%c57] : memref<72xf32, #tpu.memory_space<smem>>
    %219 = vector.broadcast %218 : f32 to vector<18x18xf32>
    %220 = arith.mulf %219, %213 : vector<18x18xf32>
    %221 = arith.addf %211, %220 : vector<18x18xf32>
    %c0_89 = arith.constant 0 : index
    %c2_90 = arith.constant 2 : index
    %c1_91 = arith.constant 1 : index
    %c1_92 = arith.constant 1 : index
    %222 = vector.load %arg1[%c0_89, %c2_90, %c1_91, %c1_92] : memref<1x4x20x20xf32, #tpu.memory_space<vmem>>, vector<1x1x18x18xf32>
    %223 = vector.shape_cast %222 : vector<1x1x18x18xf32> to vector<18x18xf32>
    %c22 = arith.constant 22 : index
    %224 = memref.load %arg2[%c22] : memref<72xf32, #tpu.memory_space<smem>>
    %225 = vector.broadcast %224 : f32 to vector<18x18xf32>
    %226 = arith.mulf %225, %223 : vector<18x18xf32>
    %227 = arith.addf %217, %226 : vector<18x18xf32>
    %c58 = arith.constant 58 : index
    %228 = memref.load %arg2[%c58] : memref<72xf32, #tpu.memory_space<smem>>
    %229 = vector.broadcast %228 : f32 to vector<18x18xf32>
    %230 = arith.mulf %229, %223 : vector<18x18xf32>
    %231 = arith.addf %221, %230 : vector<18x18xf32>
    %c0_93 = arith.constant 0 : index
    %c2_94 = arith.constant 2 : index
    %c1_95 = arith.constant 1 : index
    %c2_96 = arith.constant 2 : index
    %232 = vector.load %arg1[%c0_93, %c2_94, %c1_95, %c2_96] : memref<1x4x20x20xf32, #tpu.memory_space<vmem>>, vector<1x1x18x18xf32>
    %233 = vector.shape_cast %232 : vector<1x1x18x18xf32> to vector<18x18xf32>
    %c23 = arith.constant 23 : index
    %234 = memref.load %arg2[%c23] : memref<72xf32, #tpu.memory_space<smem>>
    %235 = vector.broadcast %234 : f32 to vector<18x18xf32>
    %236 = arith.mulf %235, %233 : vector<18x18xf32>
    %237 = arith.addf %227, %236 : vector<18x18xf32>
    %c59 = arith.constant 59 : index
    %238 = memref.load %arg2[%c59] : memref<72xf32, #tpu.memory_space<smem>>
    %239 = vector.broadcast %238 : f32 to vector<18x18xf32>
    %240 = arith.mulf %239, %233 : vector<18x18xf32>
    %241 = arith.addf %231, %240 : vector<18x18xf32>
    %c0_97 = arith.constant 0 : index
    %c2_98 = arith.constant 2 : index
    %c2_99 = arith.constant 2 : index
    %c0_100 = arith.constant 0 : index
    %242 = vector.load %arg1[%c0_97, %c2_98, %c2_99, %c0_100] : memref<1x4x20x20xf32, #tpu.memory_space<vmem>>, vector<1x1x18x18xf32>
    %243 = vector.shape_cast %242 : vector<1x1x18x18xf32> to vector<18x18xf32>
    %c24 = arith.constant 24 : index
    %244 = memref.load %arg2[%c24] : memref<72xf32, #tpu.memory_space<smem>>
    %245 = vector.broadcast %244 : f32 to vector<18x18xf32>
    %246 = arith.mulf %245, %243 : vector<18x18xf32>
    %247 = arith.addf %237, %246 : vector<18x18xf32>
    %c60 = arith.constant 60 : index
    %248 = memref.load %arg2[%c60] : memref<72xf32, #tpu.memory_space<smem>>
    %249 = vector.broadcast %248 : f32 to vector<18x18xf32>
    %250 = arith.mulf %249, %243 : vector<18x18xf32>
    %251 = arith.addf %241, %250 : vector<18x18xf32>
    %c0_101 = arith.constant 0 : index
    %c2_102 = arith.constant 2 : index
    %c2_103 = arith.constant 2 : index
    %c1_104 = arith.constant 1 : index
    %252 = vector.load %arg1[%c0_101, %c2_102, %c2_103, %c1_104] : memref<1x4x20x20xf32, #tpu.memory_space<vmem>>, vector<1x1x18x18xf32>
    %253 = vector.shape_cast %252 : vector<1x1x18x18xf32> to vector<18x18xf32>
    %c25 = arith.constant 25 : index
    %254 = memref.load %arg2[%c25] : memref<72xf32, #tpu.memory_space<smem>>
    %255 = vector.broadcast %254 : f32 to vector<18x18xf32>
    %256 = arith.mulf %255, %253 : vector<18x18xf32>
    %257 = arith.addf %247, %256 : vector<18x18xf32>
    %c61 = arith.constant 61 : index
    %258 = memref.load %arg2[%c61] : memref<72xf32, #tpu.memory_space<smem>>
    %259 = vector.broadcast %258 : f32 to vector<18x18xf32>
    %260 = arith.mulf %259, %253 : vector<18x18xf32>
    %261 = arith.addf %251, %260 : vector<18x18xf32>
    %c0_105 = arith.constant 0 : index
    %c2_106 = arith.constant 2 : index
    %c2_107 = arith.constant 2 : index
    %c2_108 = arith.constant 2 : index
    %262 = vector.load %arg1[%c0_105, %c2_106, %c2_107, %c2_108] : memref<1x4x20x20xf32, #tpu.memory_space<vmem>>, vector<1x1x18x18xf32>
    %263 = vector.shape_cast %262 : vector<1x1x18x18xf32> to vector<18x18xf32>
    %c26 = arith.constant 26 : index
    %264 = memref.load %arg2[%c26] : memref<72xf32, #tpu.memory_space<smem>>
    %265 = vector.broadcast %264 : f32 to vector<18x18xf32>
    %266 = arith.mulf %265, %263 : vector<18x18xf32>
    %267 = arith.addf %257, %266 : vector<18x18xf32>
    %c62 = arith.constant 62 : index
    %268 = memref.load %arg2[%c62] : memref<72xf32, #tpu.memory_space<smem>>
    %269 = vector.broadcast %268 : f32 to vector<18x18xf32>
    %270 = arith.mulf %269, %263 : vector<18x18xf32>
    %271 = arith.addf %261, %270 : vector<18x18xf32>
    %c0_109 = arith.constant 0 : index
    %c3_110 = arith.constant 3 : index
    %c0_111 = arith.constant 0 : index
    %c0_112 = arith.constant 0 : index
    %272 = vector.load %arg1[%c0_109, %c3_110, %c0_111, %c0_112] : memref<1x4x20x20xf32, #tpu.memory_space<vmem>>, vector<1x1x18x18xf32>
    %273 = vector.shape_cast %272 : vector<1x1x18x18xf32> to vector<18x18xf32>
    %c27 = arith.constant 27 : index
    %274 = memref.load %arg2[%c27] : memref<72xf32, #tpu.memory_space<smem>>
    %275 = vector.broadcast %274 : f32 to vector<18x18xf32>
    %276 = arith.mulf %275, %273 : vector<18x18xf32>
    %277 = arith.addf %267, %276 : vector<18x18xf32>
    %c63 = arith.constant 63 : index
    %278 = memref.load %arg2[%c63] : memref<72xf32, #tpu.memory_space<smem>>
    %279 = vector.broadcast %278 : f32 to vector<18x18xf32>
    %280 = arith.mulf %279, %273 : vector<18x18xf32>
    %281 = arith.addf %271, %280 : vector<18x18xf32>
    %c0_113 = arith.constant 0 : index
    %c3_114 = arith.constant 3 : index
    %c0_115 = arith.constant 0 : index
    %c1_116 = arith.constant 1 : index
    %282 = vector.load %arg1[%c0_113, %c3_114, %c0_115, %c1_116] : memref<1x4x20x20xf32, #tpu.memory_space<vmem>>, vector<1x1x18x18xf32>
    %283 = vector.shape_cast %282 : vector<1x1x18x18xf32> to vector<18x18xf32>
    %c28 = arith.constant 28 : index
    %284 = memref.load %arg2[%c28] : memref<72xf32, #tpu.memory_space<smem>>
    %285 = vector.broadcast %284 : f32 to vector<18x18xf32>
    %286 = arith.mulf %285, %283 : vector<18x18xf32>
    %287 = arith.addf %277, %286 : vector<18x18xf32>
    %c64 = arith.constant 64 : index
    %288 = memref.load %arg2[%c64] : memref<72xf32, #tpu.memory_space<smem>>
    %289 = vector.broadcast %288 : f32 to vector<18x18xf32>
    %290 = arith.mulf %289, %283 : vector<18x18xf32>
    %291 = arith.addf %281, %290 : vector<18x18xf32>
    %c0_117 = arith.constant 0 : index
    %c3_118 = arith.constant 3 : index
    %c0_119 = arith.constant 0 : index
    %c2_120 = arith.constant 2 : index
    %292 = vector.load %arg1[%c0_117, %c3_118, %c0_119, %c2_120] : memref<1x4x20x20xf32, #tpu.memory_space<vmem>>, vector<1x1x18x18xf32>
    %293 = vector.shape_cast %292 : vector<1x1x18x18xf32> to vector<18x18xf32>
    %c29 = arith.constant 29 : index
    %294 = memref.load %arg2[%c29] : memref<72xf32, #tpu.memory_space<smem>>
    %295 = vector.broadcast %294 : f32 to vector<18x18xf32>
    %296 = arith.mulf %295, %293 : vector<18x18xf32>
    %297 = arith.addf %287, %296 : vector<18x18xf32>
    %c65 = arith.constant 65 : index
    %298 = memref.load %arg2[%c65] : memref<72xf32, #tpu.memory_space<smem>>
    %299 = vector.broadcast %298 : f32 to vector<18x18xf32>
    %300 = arith.mulf %299, %293 : vector<18x18xf32>
    %301 = arith.addf %291, %300 : vector<18x18xf32>
    %c0_121 = arith.constant 0 : index
    %c3_122 = arith.constant 3 : index
    %c1_123 = arith.constant 1 : index
    %c0_124 = arith.constant 0 : index
    %302 = vector.load %arg1[%c0_121, %c3_122, %c1_123, %c0_124] : memref<1x4x20x20xf32, #tpu.memory_space<vmem>>, vector<1x1x18x18xf32>
    %303 = vector.shape_cast %302 : vector<1x1x18x18xf32> to vector<18x18xf32>
    %c30 = arith.constant 30 : index
    %304 = memref.load %arg2[%c30] : memref<72xf32, #tpu.memory_space<smem>>
    %305 = vector.broadcast %304 : f32 to vector<18x18xf32>
    %306 = arith.mulf %305, %303 : vector<18x18xf32>
    %307 = arith.addf %297, %306 : vector<18x18xf32>
    %c66 = arith.constant 66 : index
    %308 = memref.load %arg2[%c66] : memref<72xf32, #tpu.memory_space<smem>>
    %309 = vector.broadcast %308 : f32 to vector<18x18xf32>
    %310 = arith.mulf %309, %303 : vector<18x18xf32>
    %311 = arith.addf %301, %310 : vector<18x18xf32>
    %c0_125 = arith.constant 0 : index
    %c3_126 = arith.constant 3 : index
    %c1_127 = arith.constant 1 : index
    %c1_128 = arith.constant 1 : index
    %312 = vector.load %arg1[%c0_125, %c3_126, %c1_127, %c1_128] : memref<1x4x20x20xf32, #tpu.memory_space<vmem>>, vector<1x1x18x18xf32>
    %313 = vector.shape_cast %312 : vector<1x1x18x18xf32> to vector<18x18xf32>
    %c31 = arith.constant 31 : index
    %314 = memref.load %arg2[%c31] : memref<72xf32, #tpu.memory_space<smem>>
    %315 = vector.broadcast %314 : f32 to vector<18x18xf32>
    %316 = arith.mulf %315, %313 : vector<18x18xf32>
    %317 = arith.addf %307, %316 : vector<18x18xf32>
    %c67 = arith.constant 67 : index
    %318 = memref.load %arg2[%c67] : memref<72xf32, #tpu.memory_space<smem>>
    %319 = vector.broadcast %318 : f32 to vector<18x18xf32>
    %320 = arith.mulf %319, %313 : vector<18x18xf32>
    %321 = arith.addf %311, %320 : vector<18x18xf32>
    %c0_129 = arith.constant 0 : index
    %c3_130 = arith.constant 3 : index
    %c1_131 = arith.constant 1 : index
    %c2_132 = arith.constant 2 : index
    %322 = vector.load %arg1[%c0_129, %c3_130, %c1_131, %c2_132] : memref<1x4x20x20xf32, #tpu.memory_space<vmem>>, vector<1x1x18x18xf32>
    %323 = vector.shape_cast %322 : vector<1x1x18x18xf32> to vector<18x18xf32>
    %c32 = arith.constant 32 : index
    %324 = memref.load %arg2[%c32] : memref<72xf32, #tpu.memory_space<smem>>
    %325 = vector.broadcast %324 : f32 to vector<18x18xf32>
    %326 = arith.mulf %325, %323 : vector<18x18xf32>
    %327 = arith.addf %317, %326 : vector<18x18xf32>
    %c68 = arith.constant 68 : index
    %328 = memref.load %arg2[%c68] : memref<72xf32, #tpu.memory_space<smem>>
    %329 = vector.broadcast %328 : f32 to vector<18x18xf32>
    %330 = arith.mulf %329, %323 : vector<18x18xf32>
    %331 = arith.addf %321, %330 : vector<18x18xf32>
    %c0_133 = arith.constant 0 : index
    %c3_134 = arith.constant 3 : index
    %c2_135 = arith.constant 2 : index
    %c0_136 = arith.constant 0 : index
    %332 = vector.load %arg1[%c0_133, %c3_134, %c2_135, %c0_136] : memref<1x4x20x20xf32, #tpu.memory_space<vmem>>, vector<1x1x18x18xf32>
    %333 = vector.shape_cast %332 : vector<1x1x18x18xf32> to vector<18x18xf32>
    %c33 = arith.constant 33 : index
    %334 = memref.load %arg2[%c33] : memref<72xf32, #tpu.memory_space<smem>>
    %335 = vector.broadcast %334 : f32 to vector<18x18xf32>
    %336 = arith.mulf %335, %333 : vector<18x18xf32>
    %337 = arith.addf %327, %336 : vector<18x18xf32>
    %c69 = arith.constant 69 : index
    %338 = memref.load %arg2[%c69] : memref<72xf32, #tpu.memory_space<smem>>
    %339 = vector.broadcast %338 : f32 to vector<18x18xf32>
    %340 = arith.mulf %339, %333 : vector<18x18xf32>
    %341 = arith.addf %331, %340 : vector<18x18xf32>
    %c0_137 = arith.constant 0 : index
    %c3_138 = arith.constant 3 : index
    %c2_139 = arith.constant 2 : index
    %c1_140 = arith.constant 1 : index
    %342 = vector.load %arg1[%c0_137, %c3_138, %c2_139, %c1_140] : memref<1x4x20x20xf32, #tpu.memory_space<vmem>>, vector<1x1x18x18xf32>
    %343 = vector.shape_cast %342 : vector<1x1x18x18xf32> to vector<18x18xf32>
    %c34 = arith.constant 34 : index
    %344 = memref.load %arg2[%c34] : memref<72xf32, #tpu.memory_space<smem>>
    %345 = vector.broadcast %344 : f32 to vector<18x18xf32>
    %346 = arith.mulf %345, %343 : vector<18x18xf32>
    %347 = arith.addf %337, %346 : vector<18x18xf32>
    %c70 = arith.constant 70 : index
    %348 = memref.load %arg2[%c70] : memref<72xf32, #tpu.memory_space<smem>>
    %349 = vector.broadcast %348 : f32 to vector<18x18xf32>
    %350 = arith.mulf %349, %343 : vector<18x18xf32>
    %351 = arith.addf %341, %350 : vector<18x18xf32>
    %c0_141 = arith.constant 0 : index
    %c3_142 = arith.constant 3 : index
    %c2_143 = arith.constant 2 : index
    %c2_144 = arith.constant 2 : index
    %352 = vector.load %arg1[%c0_141, %c3_142, %c2_143, %c2_144] : memref<1x4x20x20xf32, #tpu.memory_space<vmem>>, vector<1x1x18x18xf32>
    %353 = vector.shape_cast %352 : vector<1x1x18x18xf32> to vector<18x18xf32>
    %c35 = arith.constant 35 : index
    %354 = memref.load %arg2[%c35] : memref<72xf32, #tpu.memory_space<smem>>
    %355 = vector.broadcast %354 : f32 to vector<18x18xf32>
    %356 = arith.mulf %355, %353 : vector<18x18xf32>
    %357 = arith.addf %347, %356 : vector<18x18xf32>
    %c71 = arith.constant 71 : index
    %358 = memref.load %arg2[%c71] : memref<72xf32, #tpu.memory_space<smem>>
    %359 = vector.broadcast %358 : f32 to vector<18x18xf32>
    %360 = arith.mulf %359, %353 : vector<18x18xf32>
    %361 = arith.addf %351, %360 : vector<18x18xf32>
    %362 = tpu.iota {dimensions = array<i32: 0>} : vector<18x18xi32>
    %363 = tpu.iota {dimensions = array<i32: 1>} : vector<18x18xi32>
    %c1_i32 = arith.constant 1 : i32
    %364 = vector.broadcast %c1_i32 : i32 to vector<18x18xi32>
    %365 = arith.cmpi sge, %362, %364 : vector<18x18xi32>
    %c16_i32 = arith.constant 16 : i32
    %366 = vector.broadcast %c16_i32 : i32 to vector<18x18xi32>
    %367 = arith.cmpi sle, %362, %366 : vector<18x18xi32>
    %368 = arith.andi %365, %367 : vector<18x18xi1>
    %c1_i32_145 = arith.constant 1 : i32
    %369 = vector.broadcast %c1_i32_145 : i32 to vector<18x18xi32>
    %370 = arith.cmpi sge, %363, %369 : vector<18x18xi32>
    %371 = arith.andi %368, %370 : vector<18x18xi1>
    %c16_i32_146 = arith.constant 16 : i32
    %372 = vector.broadcast %c16_i32_146 : i32 to vector<18x18xi32>
    %373 = arith.cmpi sle, %363, %372 : vector<18x18xi32>
    %374 = arith.andi %371, %373 : vector<18x18xi1>
    %c0_147 = arith.constant 0 : index
    %375 = memref.load %arg3[%c0_147] : memref<2xf32, #tpu.memory_space<smem>>
    %376 = vector.broadcast %375 : f32 to vector<18x18xf32>
    %377 = arith.mulf %376, %357 : vector<18x18xf32>
    %c0_148 = arith.constant 0 : index
    %378 = memref.load %arg4[%c0_148] : memref<2xf32, #tpu.memory_space<smem>>
    %379 = vector.broadcast %378 : f32 to vector<18x18xf32>
    %380 = arith.addf %377, %379 : vector<18x18xf32>
    %cst_149 = arith.constant 0.000000e+00 : f32
    %381 = vector.broadcast %cst_149 : f32 to vector<18x18xf32>
    %382 = arith.maximumf %380, %381 : vector<18x18xf32>
    %cst_150 = arith.constant 0.000000e+00 : f32
    %383 = vector.broadcast %cst_150 : f32 to vector<18x18xf32>
    %384 = arith.select %374, %382, %383 : vector<18x18xi1>, vector<18x18xf32>
    %c0_151 = arith.constant 0 : index
    %c0_152 = arith.constant 0 : index
    %c0_153 = arith.constant 0 : index
    %385 = vector.load %arg8[%c0_151, %c0_152, %c0_153] : memref<2x18x18xf32, #tpu.memory_space<vmem>>, vector<1x18x18xf32>
    %386 = vector.shape_cast %385 : vector<1x18x18xf32> to vector<18x18xf32>
    %387 = vector.shape_cast %384 : vector<18x18xf32> to vector<1x18x18xf32>
    tpu.vector_store %arg8[%c0_151, %c0_152, %c0_153], %387 {strides = array<i32>} : memref<2x18x18xf32, #tpu.memory_space<vmem>>, vector<1x18x18xf32>,
    %c1_154 = arith.constant 1 : index
    %388 = memref.load %arg3[%c1_154] : memref<2xf32, #tpu.memory_space<smem>>
    %389 = vector.broadcast %388 : f32 to vector<18x18xf32>
    %390 = arith.mulf %389, %361 : vector<18x18xf32>
    %c1_155 = arith.constant 1 : index
    %391 = memref.load %arg4[%c1_155] : memref<2xf32, #tpu.memory_space<smem>>
    %392 = vector.broadcast %391 : f32 to vector<18x18xf32>
    %393 = arith.addf %390, %392 : vector<18x18xf32>
    %cst_156 = arith.constant 0.000000e+00 : f32
    %394 = vector.broadcast %cst_156 : f32 to vector<18x18xf32>
    %395 = arith.maximumf %393, %394 : vector<18x18xf32>
    %cst_157 = arith.constant 0.000000e+00 : f32
    %396 = vector.broadcast %cst_157 : f32 to vector<18x18xf32>
    %397 = arith.select %374, %395, %396 : vector<18x18xi1>, vector<18x18xf32>
    %c1_158 = arith.constant 1 : index
    %c0_159 = arith.constant 0 : index
    %c0_160 = arith.constant 0 : index
    %398 = vector.load %arg8[%c1_158, %c0_159, %c0_160] : memref<2x18x18xf32, #tpu.memory_space<vmem>>, vector<1x18x18xf32>
    %399 = vector.shape_cast %398 : vector<1x18x18xf32> to vector<18x18xf32>
    %400 = vector.shape_cast %397 : vector<18x18xf32> to vector<1x18x18xf32>
    tpu.vector_store %arg8[%c1_158, %c0_159, %c0_160], %400 {strides = array<i32>} : memref<2x18x18xf32, #tpu.memory_space<vmem>>, vector<1x18x18xf32>,
    %cst_161 = arith.constant 0.000000e+00 : f32
    %401 = vector.broadcast %cst_161 : f32 to vector<16x16xf32>
    %c0_162 = arith.constant 0 : index
    %c0_163 = arith.constant 0 : index
    %c0_164 = arith.constant 0 : index
    %402 = vector.load %arg8[%c0_162, %c0_163, %c0_164] : memref<2x18x18xf32, #tpu.memory_space<vmem>>, vector<1x16x16xf32>
    %403 = vector.shape_cast %402 : vector<1x16x16xf32> to vector<16x16xf32>
    %c0_165 = arith.constant 0 : index
    %404 = memref.load %arg5[%c0_165] : memref<18xf32, #tpu.memory_space<smem>>
    %405 = vector.broadcast %404 : f32 to vector<16x16xf32>
    %406 = arith.mulf %405, %403 : vector<16x16xf32>
    %407 = arith.addf %401, %406 : vector<16x16xf32>
    %c0_166 = arith.constant 0 : index
    %c0_167 = arith.constant 0 : index
    %c1_168 = arith.constant 1 : index
    %408 = vector.load %arg8[%c0_166, %c0_167, %c1_168] : memref<2x18x18xf32, #tpu.memory_space<vmem>>, vector<1x16x16xf32>
    %409 = vector.shape_cast %408 : vector<1x16x16xf32> to vector<16x16xf32>
    %c1_169 = arith.constant 1 : index
    %410 = memref.load %arg5[%c1_169] : memref<18xf32, #tpu.memory_space<smem>>
    %411 = vector.broadcast %410 : f32 to vector<16x16xf32>
    %412 = arith.mulf %411, %409 : vector<16x16xf32>
    %413 = arith.addf %407, %412 : vector<16x16xf32>
    %c0_170 = arith.constant 0 : index
    %c0_171 = arith.constant 0 : index
    %c2_172 = arith.constant 2 : index
    %414 = vector.load %arg8[%c0_170, %c0_171, %c2_172] : memref<2x18x18xf32, #tpu.memory_space<vmem>>, vector<1x16x16xf32>
    %415 = vector.shape_cast %414 : vector<1x16x16xf32> to vector<16x16xf32>
    %c2_173 = arith.constant 2 : index
    %416 = memref.load %arg5[%c2_173] : memref<18xf32, #tpu.memory_space<smem>>
    %417 = vector.broadcast %416 : f32 to vector<16x16xf32>
    %418 = arith.mulf %417, %415 : vector<16x16xf32>
    %419 = arith.addf %413, %418 : vector<16x16xf32>
    %c0_174 = arith.constant 0 : index
    %c1_175 = arith.constant 1 : index
    %c0_176 = arith.constant 0 : index
    %420 = vector.load %arg8[%c0_174, %c1_175, %c0_176] : memref<2x18x18xf32, #tpu.memory_space<vmem>>, vector<1x16x16xf32>
    %421 = vector.shape_cast %420 : vector<1x16x16xf32> to vector<16x16xf32>
    %c3_177 = arith.constant 3 : index
    %422 = memref.load %arg5[%c3_177] : memref<18xf32, #tpu.memory_space<smem>>
    %423 = vector.broadcast %422 : f32 to vector<16x16xf32>
    %424 = arith.mulf %423, %421 : vector<16x16xf32>
    %425 = arith.addf %419, %424 : vector<16x16xf32>
    %c0_178 = arith.constant 0 : index
    %c1_179 = arith.constant 1 : index
    %c1_180 = arith.constant 1 : index
    %426 = vector.load %arg8[%c0_178, %c1_179, %c1_180] : memref<2x18x18xf32, #tpu.memory_space<vmem>>, vector<1x16x16xf32>
    %427 = vector.shape_cast %426 : vector<1x16x16xf32> to vector<16x16xf32>
    %c4_181 = arith.constant 4 : index
    %428 = memref.load %arg5[%c4_181] : memref<18xf32, #tpu.memory_space<smem>>
    %429 = vector.broadcast %428 : f32 to vector<16x16xf32>
    %430 = arith.mulf %429, %427 : vector<16x16xf32>
    %431 = arith.addf %425, %430 : vector<16x16xf32>
    %c0_182 = arith.constant 0 : index
    %c1_183 = arith.constant 1 : index
    %c2_184 = arith.constant 2 : index
    %432 = vector.load %arg8[%c0_182, %c1_183, %c2_184] : memref<2x18x18xf32, #tpu.memory_space<vmem>>, vector<1x16x16xf32>
    %433 = vector.shape_cast %432 : vector<1x16x16xf32> to vector<16x16xf32>
    %c5_185 = arith.constant 5 : index
    %434 = memref.load %arg5[%c5_185] : memref<18xf32, #tpu.memory_space<smem>>
    %435 = vector.broadcast %434 : f32 to vector<16x16xf32>
    %436 = arith.mulf %435, %433 : vector<16x16xf32>
    %437 = arith.addf %431, %436 : vector<16x16xf32>
    %c0_186 = arith.constant 0 : index
    %c2_187 = arith.constant 2 : index
    %c0_188 = arith.constant 0 : index
    %438 = vector.load %arg8[%c0_186, %c2_187, %c0_188] : memref<2x18x18xf32, #tpu.memory_space<vmem>>, vector<1x16x16xf32>
    %439 = vector.shape_cast %438 : vector<1x16x16xf32> to vector<16x16xf32>
    %c6_189 = arith.constant 6 : index
    %440 = memref.load %arg5[%c6_189] : memref<18xf32, #tpu.memory_space<smem>>
    %441 = vector.broadcast %440 : f32 to vector<16x16xf32>
    %442 = arith.mulf %441, %439 : vector<16x16xf32>
    %443 = arith.addf %437, %442 : vector<16x16xf32>
    %c0_190 = arith.constant 0 : index
    %c2_191 = arith.constant 2 : index
    %c1_192 = arith.constant 1 : index
    %444 = vector.load %arg8[%c0_190, %c2_191, %c1_192] : memref<2x18x18xf32, #tpu.memory_space<vmem>>, vector<1x16x16xf32>
    %445 = vector.shape_cast %444 : vector<1x16x16xf32> to vector<16x16xf32>
    %c7_193 = arith.constant 7 : index
    %446 = memref.load %arg5[%c7_193] : memref<18xf32, #tpu.memory_space<smem>>
    %447 = vector.broadcast %446 : f32 to vector<16x16xf32>
    %448 = arith.mulf %447, %445 : vector<16x16xf32>
    %449 = arith.addf %443, %448 : vector<16x16xf32>
    %c0_194 = arith.constant 0 : index
    %c2_195 = arith.constant 2 : index
    %c2_196 = arith.constant 2 : index
    %450 = vector.load %arg8[%c0_194, %c2_195, %c2_196] : memref<2x18x18xf32, #tpu.memory_space<vmem>>, vector<1x16x16xf32>
    %451 = vector.shape_cast %450 : vector<1x16x16xf32> to vector<16x16xf32>
    %c8_197 = arith.constant 8 : index
    %452 = memref.load %arg5[%c8_197] : memref<18xf32, #tpu.memory_space<smem>>
    %453 = vector.broadcast %452 : f32 to vector<16x16xf32>
    %454 = arith.mulf %453, %451 : vector<16x16xf32>
    %455 = arith.addf %449, %454 : vector<16x16xf32>
    %c1_198 = arith.constant 1 : index
    %c0_199 = arith.constant 0 : index
    %c0_200 = arith.constant 0 : index
    %456 = vector.load %arg8[%c1_198, %c0_199, %c0_200] : memref<2x18x18xf32, #tpu.memory_space<vmem>>, vector<1x16x16xf32>
    %457 = vector.shape_cast %456 : vector<1x16x16xf32> to vector<16x16xf32>
    %c9_201 = arith.constant 9 : index
    %458 = memref.load %arg5[%c9_201] : memref<18xf32, #tpu.memory_space<smem>>
    %459 = vector.broadcast %458 : f32 to vector<16x16xf32>
    %460 = arith.mulf %459, %457 : vector<16x16xf32>
    %461 = arith.addf %455, %460 : vector<16x16xf32>
    %c1_202 = arith.constant 1 : index
    %c0_203 = arith.constant 0 : index
    %c1_204 = arith.constant 1 : index
    %462 = vector.load %arg8[%c1_202, %c0_203, %c1_204] : memref<2x18x18xf32, #tpu.memory_space<vmem>>, vector<1x16x16xf32>
    %463 = vector.shape_cast %462 : vector<1x16x16xf32> to vector<16x16xf32>
    %c10_205 = arith.constant 10 : index
    %464 = memref.load %arg5[%c10_205] : memref<18xf32, #tpu.memory_space<smem>>
    %465 = vector.broadcast %464 : f32 to vector<16x16xf32>
    %466 = arith.mulf %465, %463 : vector<16x16xf32>
    %467 = arith.addf %461, %466 : vector<16x16xf32>
    %c1_206 = arith.constant 1 : index
    %c0_207 = arith.constant 0 : index
    %c2_208 = arith.constant 2 : index
    %468 = vector.load %arg8[%c1_206, %c0_207, %c2_208] : memref<2x18x18xf32, #tpu.memory_space<vmem>>, vector<1x16x16xf32>
    %469 = vector.shape_cast %468 : vector<1x16x16xf32> to vector<16x16xf32>
    %c11_209 = arith.constant 11 : index
    %470 = memref.load %arg5[%c11_209] : memref<18xf32, #tpu.memory_space<smem>>
    %471 = vector.broadcast %470 : f32 to vector<16x16xf32>
    %472 = arith.mulf %471, %469 : vector<16x16xf32>
    %473 = arith.addf %467, %472 : vector<16x16xf32>
    %c1_210 = arith.constant 1 : index
    %c1_211 = arith.constant 1 : index
    %c0_212 = arith.constant 0 : index
    %474 = vector.load %arg8[%c1_210, %c1_211, %c0_212] : memref<2x18x18xf32, #tpu.memory_space<vmem>>, vector<1x16x16xf32>
    %475 = vector.shape_cast %474 : vector<1x16x16xf32> to vector<16x16xf32>
    %c12_213 = arith.constant 12 : index
    %476 = memref.load %arg5[%c12_213] : memref<18xf32, #tpu.memory_space<smem>>
    %477 = vector.broadcast %476 : f32 to vector<16x16xf32>
    %478 = arith.mulf %477, %475 : vector<16x16xf32>
    %479 = arith.addf %473, %478 : vector<16x16xf32>
    %c1_214 = arith.constant 1 : index
    %c1_215 = arith.constant 1 : index
    %c1_216 = arith.constant 1 : index
    %480 = vector.load %arg8[%c1_214, %c1_215, %c1_216] : memref<2x18x18xf32, #tpu.memory_space<vmem>>, vector<1x16x16xf32>
    %481 = vector.shape_cast %480 : vector<1x16x16xf32> to vector<16x16xf32>
    %c13_217 = arith.constant 13 : index
    %482 = memref.load %arg5[%c13_217] : memref<18xf32, #tpu.memory_space<smem>>
    %483 = vector.broadcast %482 : f32 to vector<16x16xf32>
    %484 = arith.mulf %483, %481 : vector<16x16xf32>
    %485 = arith.addf %479, %484 : vector<16x16xf32>
    %c1_218 = arith.constant 1 : index
    %c1_219 = arith.constant 1 : index
    %c2_220 = arith.constant 2 : index
    %486 = vector.load %arg8[%c1_218, %c1_219, %c2_220] : memref<2x18x18xf32, #tpu.memory_space<vmem>>, vector<1x16x16xf32>
    %487 = vector.shape_cast %486 : vector<1x16x16xf32> to vector<16x16xf32>
    %c14_221 = arith.constant 14 : index
    %488 = memref.load %arg5[%c14_221] : memref<18xf32, #tpu.memory_space<smem>>
    %489 = vector.broadcast %488 : f32 to vector<16x16xf32>
    %490 = arith.mulf %489, %487 : vector<16x16xf32>
    %491 = arith.addf %485, %490 : vector<16x16xf32>
    %c1_222 = arith.constant 1 : index
    %c2_223 = arith.constant 2 : index
    %c0_224 = arith.constant 0 : index
    %492 = vector.load %arg8[%c1_222, %c2_223, %c0_224] : memref<2x18x18xf32, #tpu.memory_space<vmem>>, vector<1x16x16xf32>
    %493 = vector.shape_cast %492 : vector<1x16x16xf32> to vector<16x16xf32>
    %c15_225 = arith.constant 15 : index
    %494 = memref.load %arg5[%c15_225] : memref<18xf32, #tpu.memory_space<smem>>
    %495 = vector.broadcast %494 : f32 to vector<16x16xf32>
    %496 = arith.mulf %495, %493 : vector<16x16xf32>
    %497 = arith.addf %491, %496 : vector<16x16xf32>
    %c1_226 = arith.constant 1 : index
    %c2_227 = arith.constant 2 : index
    %c1_228 = arith.constant 1 : index
    %498 = vector.load %arg8[%c1_226, %c2_227, %c1_228] : memref<2x18x18xf32, #tpu.memory_space<vmem>>, vector<1x16x16xf32>
    %499 = vector.shape_cast %498 : vector<1x16x16xf32> to vector<16x16xf32>
    %c16_229 = arith.constant 16 : index
    %500 = memref.load %arg5[%c16_229] : memref<18xf32, #tpu.memory_space<smem>>
    %501 = vector.broadcast %500 : f32 to vector<16x16xf32>
    %502 = arith.mulf %501, %499 : vector<16x16xf32>
    %503 = arith.addf %497, %502 : vector<16x16xf32>
    %c1_230 = arith.constant 1 : index
    %c2_231 = arith.constant 2 : index
    %c2_232 = arith.constant 2 : index
    %504 = vector.load %arg8[%c1_230, %c2_231, %c2_232] : memref<2x18x18xf32, #tpu.memory_space<vmem>>, vector<1x16x16xf32>
    %505 = vector.shape_cast %504 : vector<1x16x16xf32> to vector<16x16xf32>
    %c17_233 = arith.constant 17 : index
    %506 = memref.load %arg5[%c17_233] : memref<18xf32, #tpu.memory_space<smem>>
    %507 = vector.broadcast %506 : f32 to vector<16x16xf32>
    %508 = arith.mulf %507, %505 : vector<16x16xf32>
    %509 = arith.addf %503, %508 : vector<16x16xf32>
    %c0_234 = arith.constant 0 : index
    %510 = memref.load %arg6[%c0_234] : memref<1xf32, #tpu.memory_space<smem>>
    %511 = vector.broadcast %510 : f32 to vector<16x16xf32>
    %512 = arith.addf %509, %511 : vector<16x16xf32>
    %cst_235 = arith.constant 0.000000e+00 : f32
    %513 = vector.broadcast %cst_235 : f32 to vector<16x16xf32>
    %514 = arith.subf %513, %512 : vector<16x16xf32>
    %515 = math.exp %514 : vector<16x16xf32>
    %cst_236 = arith.constant 1.000000e+00 : f32
    %516 = vector.broadcast %cst_236 : f32 to vector<16x16xf32>
    %517 = arith.addf %516, %515 : vector<16x16xf32>
    %cst_237 = arith.constant 1.000000e+00 : f32
    %518 = vector.broadcast %cst_237 : f32 to vector<16x16xf32>
    %519 = arith.divf %518, %517 : vector<16x16xf32>
    %c0_238 = arith.constant 0 : index
    %c0_239 = arith.constant 0 : index
    %c0_240 = arith.constant 0 : index
    %c0_241 = arith.constant 0 : index
    %520 = vector.load %arg7[%c0_238, %c0_239, %c0_240, %c0_241] : memref<1x1x16x16xf32, #tpu.memory_space<vmem>>, vector<1x1x16x16xf32>
    %521 = vector.shape_cast %520 : vector<1x1x16x16xf32> to vector<16x16xf32>
    %522 = vector.shape_cast %519 : vector<16x16xf32> to vector<1x1x16x16xf32>
    tpu.vector_store %arg7[%c0_238, %c0_239, %c0_240, %c0_241], %522 {strides = array<i32>} : memref<1x1x16x16xf32, #tpu.memory_space<vmem>>, vector<1x1x16x16xf32>,
    return
  }
  func.func @transform_0(%arg0: i32) -> (i32, i32, i32, i32) {
    %c0_i32 = arith.constant 0 : i32
    %c0_i32_0 = arith.constant 0 : i32
    %c0_i32_1 = arith.constant 0 : i32
    %c0_i32_2 = arith.constant 0 : i32
    return %arg0, %c0_i32, %c0_i32_0, %c0_i32_1 : i32, i32, i32, i32
  }
  func.func @transform_1(%arg0: i32) -> i32 {
    %c0_i32 = arith.constant 0 : i32
    %c0_i32_0 = arith.constant 0 : i32
    return %c0_i32 : i32
  }
  func.func @transform_2(%arg0: i32) -> i32 {
    %c0_i32 = arith.constant 0 : i32
    %c0_i32_0 = arith.constant 0 : i32
    return %c0_i32 : i32
  }
  func.func @transform_3(%arg0: i32) -> i32 {
    %c0_i32 = arith.constant 0 : i32
    %c0_i32_0 = arith.constant 0 : i32
    return %c0_i32 : i32
  }
  func.func @transform_4(%arg0: i32) -> i32 {
    %c0_i32 = arith.constant 0 : i32
    %c0_i32_0 = arith.constant 0 : i32
    return %c0_i32 : i32
  }
  func.func @transform_5(%arg0: i32) -> i32 {
    %c0_i32 = arith.constant 0 : i32
    %c0_i32_0 = arith.constant 0 : i32
    return %c0_i32 : i32
  }
  func.func @transform_6(%arg0: i32) -> (i32, i32, i32, i32) {
    %c0_i32 = arith.constant 0 : i32
    %c0_i32_0 = arith.constant 0 : i32
    %c0_i32_1 = arith.constant 0 : i32
    %c0_i32_2 = arith.constant 0 : i32
    return %arg0, %c0_i32, %c0_i32_0, %c0_i32_1 : i32, i32, i32, i32
  }
}

</mosaic_0001>

<bundles_post_ra>
// kernel: tpu_custom_call.1
= control target key start
LH: loop header
LB: loop body
LE: loop exit
PB: predicated region body
PF: predicated region fallthrough
CT: control target
= control target key end

     0   :  { %s3469_s0 = inlined_call_operand.vmem [shape: f32[2,4,20,20], index: 0, kind: input, shape index: {}]   ;;  %s3470_s1 = inlined_call_operand.vmem [shape: f32[72], index: 1, kind: input, shape index: {}]   ;;  %s3471_s2 = inlined_call_operand.vmem [shape: f32[2], index: 2, kind: input, shape index: {}]   ;;  %s3472_s3 = inlined_call_operand.vmem [shape: f32[2], index: 3, kind: input, shape index: {}]   ;;  %s3473_s4 = inlined_call_operand.vmem [shape: f32[18], index: 4, kind: input, shape index: {}]   ;;  %s3474_s5 = inlined_call_operand.<no memory space> [shape: f32[1], index: 5, kind: input, shape index: {}]   ;;  %s3475_s6 = inlined_call_operand.hbm [shape: f32[2,1,16,16], index: 6, kind: output, shape index: {}]  }
   0x1   :  { %11 = sst [smem:[#allocation3]] %s3474_s5 }
   0x2   :  { %12 = vsyncpa [#allocation6], 0 }
   0x3   :  { %13 = vsyncpa [#allocation8], 0 }
   0x4   :  { %14 = vsyncpa [#allocation11], 0 }
   0x5   :  { %15 = vsyncpa [#allocation5], 0 }
   0x6   :  { %17 = vsyncpa [#allocation5 + $0x1], 0  ;;  %s2330_s23 = smov 0   ;;  %s2332_s24 = smov 0  }
   0x7   :  { %s2334_s25 = smov 0   ;;  %s2336_s26 = smov 0  }
   0x8 LB: > { %s2351_s5 = sadd.s32 4294967295, %s2281_s26   ;;  %s1910_s27 = sadd.s32 4294967294, %s2281_s26   ;;  %s2281_s26 = sphi %s2336_s26, %s3512_s26   ;;  %s2277_s25 = sphi %s2334_s25, %s3511_s25   ;;  %s2273_s24 = sphi %s2332_s24, %s3510_s24   ;;  %s2269_s23 = sphi %s2330_s23, %s3509_s23  }
   0x9   : > { %s2355_s28 = sadd.s32 1, %s2281_s26   ;;  %s161_s29 = sadd.s32 1, %s2277_s25 }
   0xa   : > { %s158_s30 = ssub.s32 %s2281_s26, %s2355_s28  ;;  %p171_p0 = scmp.ne.s32.totalorder %s2277_s25, %s2273_s24 }
   0xb   : > { %p159_p1 = scmp.eq.s32.totalorder %s158_s30, 0  ;;  %p172_p2 = scmp.eq.s32.totalorder %s2351_s5, 1 }
   0xc   : > { %p177_p3 = scmp.ne.s32.totalorder %s2273_s24, %s2269_s23  ;;  %p178_p4 = scmp.eq.s32.totalorder %s1910_s27, 1 }
   0xd   : > { %s2366_s7 = scalar_select %p159_p1, %s2277_s25, %s161_s29  }
   0xe   : > { %p2368_p5 = por %p172_p2, %p171_p0  ;;  %p2372_p6 = por %p178_p4, %p177_p3 }
   0xf   : > { %p1911_p7 = scmp.ge.s32.totalorder %s2281_s26, 1  ;;  %p185_p8 = scmp.lt.s32.totalorder %s2281_s26, 3 }
  0x10   : > { %s3482_s8 = scalar_select %p2368_p5, 1, 0 }
  0x11   : > { %s3483_s9 = scalar_select %p2372_p6, 1, 0 }
  0x12   : > { %p3476_p9 = scmp.eq.s32.totalorder %s2351_s5, 0  ;;  %p2379_p10 = pnand %p1911_p7, %p185_p8 }
  0x13   : > { %s209_s13 = sshll.u32 %s3471_s2, 4  ;;  %s198_s16 = sshll.u32 %s3470_s1, 4  ;;  %s210_s13 = int_to_ptr.vmem [resolvable:$true] %s209_s13  ;;  %s199_s16 = int_to_ptr.vmem [resolvable:$true] %s198_s16 }
  0x14   : > { %s3484_s10 = scalar_select %p2379_p10, 1, 0 }
  0x15   : > { %p2066_p11 = pneg %p2379_p10  ;;  %s220_s20 = sshll.u32 %s3472_s3, 4  ;;  %s2400_s20 = int_to_ptr.vmem [resolvable:$true] %s220_s20 }
  0x16   : > { %s231_s27 = sshll.u32 %s3473_s4, 4  ;;  %s2149_s29 = scalar_lea.vmem %s210_s13, 16  ;;  %s232_s27 = int_to_ptr.vmem [resolvable:$true] %s231_s27 }
  0x17   : > { %p2393_p12 = pnand %p3476_p9, %p2066_p11  ;;  %p2150_p13 = scmp.ne.s32.totalorder %s210_s13, %s2149_s29 }
  0x18   : > { %p2157_p3 = scmp.lt.s32.totalorder %s210_s13, %s210_s13  ;;  %p2158_p4 = scmp.lt.s32.totalorder %s2149_s29, %s2149_s29 }
  0x19   : > { %p2151_p0 = pneg %p2393_p12 }
  0x1a   : > { %p2159_p7 = por %p2158_p4, %p2157_p3 }
  0x1b   : > { %p2152_p1 = pnand %p2151_p0, %p2150_p13 }
  0x1d   : > { %p2153_p2 = pneg %p2152_p1 }
  0x1f   : > { %p2160_p8 = pnand %p2159_p7, %p2153_p2 }
  0x21   : > { %2163 = shalt.err (!%p2160_p8)
}
  0x22   : > { %s2283_s30 = smov [#allocation7]   ;;  %s2164_s11 = scalar_lea.vmem %s199_s16, 16 }
  0x23   : > { %2072 = dma.vmem_to_smem (!%p2393_p12), %s210_s13, 16, %s2283_s30, [#allocation8]  }
  0x24   : > { %p2165_p11 = scmp.ne.s32.totalorder %s199_s16, %s2164_s11  ;;  %p2172_p5 = scmp.lt.s32.totalorder %s199_s16, %s199_s16 }
  0x25   : > { %p2173_p10 = scmp.lt.s32.totalorder %s2164_s11, %s2164_s11 }
  0x26   : > { %p2167_p9 = pnand %p2165_p11, %p2151_p0 }
  0x27   : > { %p2174_p13 = por %p2173_p10, %p2172_p5 }
  0x28   : > { %p2168_p6 = pneg %p2167_p9 }
  0x2a   : > { %p2175_p1 = pnand %p2174_p13, %p2168_p6 }
  0x2c   : > { %2178 = shalt.err (!%p2175_p1)
}
  0x2d   : > { %s2284_s12 = smov [#allocation4]   ;;  %s2179_s13 = scalar_lea.vmem %s2400_s20, 16 }
  0x2e   : > { %2069 = dma.vmem_to_smem (!%p2393_p12), %s199_s16, 16, %s2284_s12, [#allocation6]  }
  0x2f   : > { %p2180_p2 = scmp.ne.s32.totalorder %s2400_s20, %s2179_s13  ;;  %p2187_p9 = scmp.lt.s32.totalorder %s2400_s20, %s2400_s20 }
  0x30   : > { %p2188_p7 = scmp.lt.s32.totalorder %s2179_s13, %s2179_s13 }
  0x31   : > { %p2182_p3 = pnand %p2180_p2, %p2151_p0 }
  0x32   : > { %p2189_p5 = por %p2188_p7, %p2187_p9 }
  0x33   : > { %p2183_p4 = pneg %p2182_p3 }
  0x35   : > { %p2190_p6 = pnand %p2189_p5, %p2183_p4 }
  0x37   : > { %2193 = shalt.err (!%p2190_p6)
}
  0x38   : > { %s2285_s14 = smov [#allocation9]   ;;  %s2194_s18 = scalar_lea.vmem %s232_s27, 16 }
  0x39   : > { %2075 = dma.vmem_to_smem (!%p2393_p12), %s2400_s20, 16, %s2285_s14, [#allocation8]  }
  0x3a   : > { %p2195_p10 = scmp.ne.s32.totalorder %s232_s27, %s2194_s18  ;;  %p2202_p13 = scmp.lt.s32.totalorder %s232_s27, %s232_s27 }
  0x3b   : > { %p2203_p1 = scmp.lt.s32.totalorder %s2194_s18, %s2194_s18 }
  0x3c   : > { %p2197_p8 = pnand %p2195_p10, %p2151_p0 }
  0x3d   : > { %p2204_p2 = por %p2203_p1, %p2202_p13 }
  0x3e   : > { %p2198_p11 = pneg %p2197_p8 }
  0x40   : > { %p2205_p3 = pnand %p2204_p2, %p2198_p11 }
  0x42   : > { %2208 = shalt.err (!%p2205_p3)
}
  0x43   : > { %s2286_s19 = smov [#allocation10]   ;;  %p3486_p4 = scmp.ne.s32.totalorder %s3484_s10, 0 }
  0x44   : > { %2078 = dma.vmem_to_smem (!%p2393_p12), %s232_s27, 16, %s2286_s19, [#allocation11]  }
  0x45   : > { %255 = sbr.rel (%p3486_p4) target bundleno = 699 (0x2bb), region = 44 }
  0x4a   : > { %p3487_p9 = scmp.eq.s32.totalorder %s2351_s5, 0 }
  0x4c   : > { %2252 = dma.done.wait (%p3487_p9), [#allocation6], 16   ;;  %p3488_p7 = pmov %p3487_p9 }
  0x4e   : > { %2254 = vsyncadd (%p3488_p7), [#allocation6], 4294967280  ;;  %p3489_p0 = pmov %p3488_p7 }
  0x50   : > { %2256 = dma.done.wait (%p3489_p0), [#allocation8], 32   ;;  %p3490_p5 = pmov %p3489_p0 }
  0x51   : > { %p3491_p6 = pmov %p3489_p0 }
  0x52   : > { %2258 = vsyncadd (%p3490_p5), [#allocation8], 4294967264 }
  0x53   : > { %2260 = dma.done.wait (%p3491_p6), [#allocation11], 16   ;;  %p3492_p12 = pmov %p3489_p0 }
  0x55   : > { %2262 = vsyncadd (%p3492_p12), [#allocation11], 4294967280 }
  0x56   : > { %273 = sfence }
  0x57   : > { %p298_p10 = scmp.lt.s32.totalorder %s2351_s5, 1  ;;  %s1925_s10 = sld [smem:[#allocation4 + $0x1]]  ;;  %vm1533_vm5 = vcmask 146432   ;;  %vm1536_vm9 = vcmask 140288   ;;  %vm1790_vm11 = vcmask 130048  }
  0x58   : > { %s1926_s17 = sld [smem:[#allocation4 + $0x25]]  ;;  %s2287_s11 = smov 127  }
  0x59   : > { %s299_s20 = scalar_select %p298_p10, %s2351_s5, 1 }
  0x5a   : > { %s1927_s30 = sld [smem:[#allocation4 + $0x2]]  ;;  %s2288_s14 = smov 126  }
  0x5b   : > { %s2047_s21 = smul.u32 96, %s299_s20  ;;  %s1928_s12 = sld [smem:[#allocation4 + $0x26]] }
  0x5c   : > { %s1931_s13 = sld [smem:[#allocation4 + $0x4]]  ;;  %p3507_p11 = scmp.ne.s32.totalorder %s3482_s8, 0 }
  0x5d   : > { %s2455_s29 = scalar_lea.vmem %s3469_s0, %s2047_s21  ;;  %v323_v0 = vstv %s1925_s10  ;;  %s1932_s15 = sld [smem:[#allocation4 + $0x28]] }
  0x5e   : > { %v2458_v1 = vld [vmem:[%s2455_s29 + $0x10] sm:$0x3]  ;;  %v2461_v2 = vld [vmem:[%s2455_s29] sm:$0xff]  ;;  %v343_v3 = vstv %s1926_s17  ;;  %v2464_v4 = vld [vmem:[%s2455_s29 + $0x8] sm:$0xff]  ;;  %s1933_s16 = sld [smem:[#allocation4 + $0x5]] }
  0x5f   : > { %v326_v5 = vmul.f32 %v323_v0, %v2458_v1  ;;  %v324_v6 = vmul.f32 %v323_v0, %v2461_v2  ;;  %v344_v7 = vmul.f32 %v343_v3, %v2461_v2  ;;  %v325_v8 = vmul.f32 %v323_v0, %v2464_v4  ;;  %v2489_v19 = vld [vmem:[%s2455_s29 + $0x9] sm:$0xff]  ;;  %v2492_v21 = vld [vmem:[%s2455_s29 + $0x1] sm:$0xff]  ;;  %v2499_v25 = vld [vmem:[%s2455_s29 + $0x11] sm:$0x3]  ;;  %s1934_s18 = sld [smem:[#allocation4 + $0x29]] }
  0x60   : > { %v346_v9 = vmul.f32 %v343_v3, %v2458_v1  ;;  %v345_v10 = vmul.f32 %v343_v3, %v2464_v4  ;;  %v363_v11 = vstv %s1927_s30  ;;  %s1937_s19 = sld [smem:[#allocation4 + $0x7]]  ;;  %v2522_v38 = vld [vmem:[%s2455_s29 + $0xa] sm:$0xff]  ;;  %v2525_v40 = vld [vmem:[%s2455_s29 + $0x2] sm:$0xff]  ;;  %v2532_v44 = vld [vmem:[%s2455_s29 + $0x12] sm:$0x3] }
  0x61   : > { %334 = vrot.lane.b32.xlu1 %v326_v5, %s2287_s11  ;;  %330 = vrot.lane.b32.xlu0 %v324_v6, %s2287_s11  ;;  %v365_v12 = vmul.f32 %v363_v11, %v2464_v4  ;;  %v364_v13 = vmul.f32 %v363_v11, %v2461_v2  ;;  %v383_v14 = vstv %s1928_s12  ;;  %v366_v16 = vmul.f32 %v363_v11, %v2458_v1  ;;  %s1938_s10 = sld [smem:[#allocation4 + $0x2b]]  ;;  %v2555_v57 = vld [vmem:[%s2455_s29 + $0x20] sm:$0xff] }
  0x62   : > { %v384_v15 = vmul.f32 %v383_v14, %v2461_v2  ;;  %v386_v17 = vmul.f32 %v383_v14, %v2458_v1  ;;  %v385_v18 = vmul.f32 %v383_v14, %v2464_v4  ;;  %v422_v20 = vstv %s1931_s13  ;;  %s1939_s17 = sld [smem:[#allocation4 + $0x8]]  ;;  %v2558_v59 = vld [vmem:[%s2455_s29 + $0x18] sm:$0xff]  ;;  %v2567_v63 = vld [vmem:[%s2455_s29 + $0x28] sm:$0x3] }
  0x63   : > { %v424_v22 = vmul.f32 %v422_v20, %v2489_v19  ;;  %v423_v23 = vmul.f32 %v422_v20, %v2492_v21  ;;  %v442_v24 = vstv %s1932_s15  ;;  %v425_v27 = vmul.f32 %v422_v20, %v2499_v25  ;;  %s1940_s20 = sld [smem:[#allocation4 + $0x2c]] }
  0x64   : > { %v443_v26 = vmul.f32 %v442_v24, %v2492_v21  ;;  %v445_v28 = vmul.f32 %v442_v24, %v2499_v25  ;;  %v444_v29 = vmul.f32 %v442_v24, %v2489_v19  ;;  %v462_v30 = vstv %s1933_s16  ;;  %s1946_s21 = sld [smem:[#allocation4 + $0xa]] }
  0x65   : > { %350 = vrot.lane.b32.xlu1 %v344_v7, %s2287_s11  ;;  %332 = vrot.lane.b32.xlu0 %v325_v8, %s2287_s11  ;;  %v464_v31 = vmul.f32 %v462_v30, %v2489_v19  ;;  %v463_v32 = vmul.f32 %v462_v30, %v2492_v21  ;;  %v482_v33 = vstv %s1934_s18  ;;  %v465_v35 = vmul.f32 %v462_v30, %v2499_v25  ;;  %s1947_s22 = sld [smem:[#allocation4 + $0x2e]]  ;;  %v2580_v8 = vld [vmem:[%s2455_s29 + $0x19] sm:$0xff] }
  0x66   : > { %v483_v34 = vmul.f32 %v482_v33, %v2492_v21  ;;  %v485_v36 = vmul.f32 %v482_v33, %v2499_v25  ;;  %v484_v37 = vmul.f32 %v482_v33, %v2489_v19  ;;  %v521_v39 = vstv %s1937_s19  ;;  %s1948_s27 = sld [smem:[#allocation4 + $0xb]] }
  0x67   : > { %v523_v41 = vmul.f32 %v521_v39, %v2522_v38  ;;  %v522_v42 = vmul.f32 %v521_v39, %v2525_v40  ;;  %v541_v43 = vstv %s1938_s10  ;;  %v524_v46 = vmul.f32 %v521_v39, %v2532_v44  ;;  %s1955_s30 = sld [smem:[#allocation4 + $0xd]]  ;;  %v2631_v39 = vld [vmem:[%s2455_s29 + $0x38] sm:$0xff] }
  0x68   : > { %v542_v45 = vmul.f32 %v541_v43, %v2525_v40  ;;  %v544_v47 = vmul.f32 %v541_v43, %v2532_v44  ;;  %v543_v48 = vmul.f32 %v541_v43, %v2522_v38  ;;  %v561_v49 = vstv %s1939_s17  ;;  %s1957_s12 = sld [smem:[#allocation4 + $0xe]] }
  0x69   : > { %354 = vrot.lane.b32.xlu1 %v346_v9, %s2287_s11  ;;  %352 = vrot.lane.b32.xlu0 %v345_v10, %s2287_s11  ;;  %v563_v50 = vmul.f32 %v561_v49, %v2522_v38  ;;  %v562_v51 = vmul.f32 %v561_v49, %v2525_v40  ;;  %v581_v52 = vstv %s1940_s20  ;;  %v564_v54 = vmul.f32 %v561_v49, %v2532_v44  ;;  %s1964_s13 = sld [smem:[#allocation4 + $0x10]] }
  0x6a   : > { %v582_v53 = vmul.f32 %v581_v52, %v2525_v40  ;;  %v584_v55 = vmul.f32 %v581_v52, %v2532_v44  ;;  %v583_v56 = vmul.f32 %v581_v52, %v2522_v38  ;;  %v621_v58 = vstv %s1946_s21  ;;  %s1966_s15 = sld [smem:[#allocation4 + $0x11]] }
  0x6b   : > { %v623_v60 = vmul.f32 %v2555_v57, %v621_v58  ;;  %v622_v61 = vmul.f32 %v2558_v59, %v621_v58  ;;  %v2564_v62 = vstv %s1947_s22  ;;  %v624_v3 = vmul.f32 %v2567_v63, %v621_v58  ;;  %s1973_s16 = sld [smem:[#allocation4 + $0x13]]  ;;  %v2660_v58 = vld [vmem:[%s2455_s29 + $0x40] sm:$0x3] }
  0x6c   : > { %v642_v0 = vmul.f32 %v2558_v59, %v2564_v62  ;;  %v661_v5 = vstv %s1948_s27  ;;  %v643_v7 = vmul.f32 %v2555_v57, %v2564_v62  ;;  %s1949_s18 = sld [smem:[#allocation4 + $0x2f]] }
  0x6d   : > { %372 = vrot.lane.b32.xlu1 %v365_v12, %s2288_s14  ;;  %370 = vrot.lane.b32.xlu0 %v364_v13, %s2288_s14  ;;  %v662_v6 = vmul.f32 %v2558_v59, %v661_v5  ;;  %v720_v9 = vstv %s1955_s30  ;;  %v663_v11 = vmul.f32 %v2555_v57, %v661_v5  ;;  %v2587_v12 = vld [vmem:[%s2455_s29 + $0x21] sm:$0xff]  ;;  %v664_v13 = vmul.f32 %v2567_v63, %v661_v5  ;;  %s1975_s19 = sld [smem:[#allocation4 + $0x14]] }
  0x6e   : > { %v721_v10 = vmul.f32 %v2580_v8, %v720_v9  ;;  %v722_v14 = vmul.f32 %v2587_v12, %v720_v9  ;;  %s1956_s10 = sld [smem:[#allocation4 + $0x31]] }
  0x6f   : > { %v819_v20 = vstv %s1964_s13  ;;  %s306_s17 = sld [smem:[#allocation4]] }
  0x70   : > { %s1924_s20 = sld [smem:[#allocation4 + $0x24]] }
  0x71   : > { %390 = vrot.lane.b32.xlu1 %v384_v15, %s2288_s14  ;;  %374 = vrot.lane.b32.xlu0 %v366_v16, %s2288_s14  ;;  %v760_v15 = vstv %s1957_s12  ;;  %v919_v33 = vstv %s1973_s16  ;;  %s1929_s21 = sld [smem:[#allocation4 + $0x3]] }
  0x72   : > { %v762_v16 = vmul.f32 %v2587_v12, %v760_v15  ;;  %s1982_s22 = sld [smem:[#allocation4 + $0x16]] }
  0x73   : > { %s1930_s27 = sld [smem:[#allocation4 + $0x27]] }
  0x74   : > { %s2662_s30 = sld [smem:[#allocation4 + $0x32]] }
  0x75   : > { %394 = vrot.lane.b32.xlu1 %v386_v17, %s2288_s14  ;;  %392 = vrot.lane.b32.xlu0 %v385_v18, %s2288_s14  ;;  %v761_v17 = vmul.f32 %v2580_v8, %v760_v15  ;;  %v2598_v18 = vld [vmem:[%s2455_s29 + $0x1a] sm:$0xff]  ;;  %v307_v52 = vstv %s306_s17  ;;  %s1984_s12 = sld [smem:[#allocation4 + $0x17]] }
  0x76   : > { %s1965_s13 = sld [smem:[#allocation4 + $0x34]] }
  0x77   : > { %s1991_s16 = sld [smem:[#allocation4 + $0x19]] }
  0x78   : > { %s1974_s17 = sld [smem:[#allocation4 + $0x37]] }
  0x79   : > { %431 = vrot.lane.b32.xlu1 %v424_v22, %s2287_s11  ;;  %429 = vrot.lane.b32.xlu0 %v423_v23, %s2287_s11  ;;  %v2601_v22 = vld [vmem:[%s2455_s29 + $0x29] sm:$0x3]  ;;  %v820_v23 = vmul.f32 %v2598_v18, %v819_v20 }
  0x7a   : > { %v723_v24 = vmul.f32 %v2601_v22, %v720_v9  ;;  %v922_v9 = vmul.f32 %v2660_v58, %v919_v33 }
  0x7d   : > { %449 = vrot.lane.b32.xlu1 %v443_v26, %s2287_s11  ;;  %433 = vrot.lane.b32.xlu0 %v425_v27, %s2287_s11  ;;  %v2608_v26 = vld [vmem:[%s2455_s29 + $0x22] sm:$0xff]  ;;  %v763_v27 = vmul.f32 %v2601_v22, %v760_v15 }
  0x81   : > { %453 = vrot.lane.b32.xlu1 %v445_v28, %s2287_s11  ;;  %451 = vrot.lane.b32.xlu0 %v444_v29, %s2287_s11  ;;  %v821_v28 = vmul.f32 %v2608_v26, %v819_v20  ;;  %v859_v29 = vstv %s1966_s15  ;;  %s1935_s15 = sld [smem:[#allocation4 + $0x6]] }
  0x82   : > { %v861_v30 = vmul.f32 %v2608_v26, %v859_v29 }
  0x85   : > { %471 = vrot.lane.b32.xlu1 %v464_v31, %s2288_s14  ;;  %469 = vrot.lane.b32.xlu0 %v463_v32, %s2288_s14  ;;  %v860_v31 = vmul.f32 %v2598_v18, %v859_v29  ;;  %v2619_v32 = vld [vmem:[%s2455_s29 + $0x30] sm:$0xff] }
  0x89   : > { %489 = vrot.lane.b32.xlu1 %v483_v34, %s2288_s14  ;;  %473 = vrot.lane.b32.xlu0 %v465_v35, %s2288_s14  ;;  %v2622_v34 = vld [vmem:[%s2455_s29 + $0x2a] sm:$0x3]  ;;  %v920_v35 = vmul.f32 %v2619_v32, %v919_v33 }
  0x8a   : > { %v862_v43 = vmul.f32 %v2622_v34, %v859_v29 }
  0x8d   : > { %493 = vrot.lane.b32.xlu1 %v485_v36, %s2288_s14  ;;  %491 = vrot.lane.b32.xlu0 %v484_v37, %s2288_s14  ;;  %v822_v36 = vmul.f32 %v2622_v34, %v819_v20  ;;  %v2628_v37 = vstv %s1949_s18  ;;  %v414_v20 = vstv %s1930_s27  ;;  %s1936_s18 = sld [smem:[#allocation4 + $0x2a]] }
  0x8e   : > { %s1976_s27 = sld [smem:[#allocation4 + $0x38]] }
  0x91   : > { %530 = vrot.lane.b32.xlu1 %v523_v41, %s2287_s11  ;;  %528 = vrot.lane.b32.xlu0 %v522_v42, %s2287_s11  ;;  %v682_v41 = vmul.f32 %v2558_v59, %v2628_v37  ;;  %v921_v42 = vmul.f32 %v2631_v39, %v919_v33 }
  0x95   : > { %548 = vrot.lane.b32.xlu1 %v542_v45, %s2287_s11  ;;  %532 = vrot.lane.b32.xlu0 %v524_v46, %s2287_s11  ;;  %v683_v45 = vmul.f32 %v2555_v57, %v2628_v37  ;;  %v2643_v46 = vstv %s1975_s19  ;;  %s1967_s19 = sld [smem:[#allocation4 + $0x35]] }
  0x96   : > { %v961_v49 = vmul.f32 %v2631_v39, %v2643_v46 }
  0x99   : > { %552 = vrot.lane.b32.xlu1 %v544_v47, %s2287_s11  ;;  %550 = vrot.lane.b32.xlu0 %v543_v48, %s2287_s11 }
  0x9d   : > { %570 = vrot.lane.b32.xlu1 %v563_v50, %s2288_s14  ;;  %568 = vrot.lane.b32.xlu0 %v562_v51, %s2288_s14  ;;  %v960_v50 = vmul.f32 %v2619_v32, %v2643_v46  ;;  %v2651_v51 = vstv %s1956_s10  ;;  %s1993_s10 = sld [smem:[#allocation4 + $0x1a]] }
  0xa1   : > { %588 = vrot.lane.b32.xlu1 %v582_v53, %s2288_s14  ;;  %572 = vrot.lane.b32.xlu0 %v564_v54, %s2288_s14 }
  0xa5   : > { %592 = vrot.lane.b32.xlu1 %v584_v55, %s2288_s14  ;;  %590 = vrot.lane.b32.xlu0 %v583_v56, %s2288_s14  ;;  %v741_v55 = vmul.f32 %v2580_v8, %v2651_v51  ;;  %v644_v56 = vmul.f32 %v2567_v63, %v2564_v62  ;;  %v742_v62 = vmul.f32 %v2587_v12, %v2651_v51 }
  0xa9   : > { %630 = vrot.lane.b32.xlu1 %v623_v60, %s2287_s11  ;;  %628 = vrot.lane.b32.xlu0 %v622_v61, %s2287_s11  ;;  %v308_v60 = vmul.f32 %v307_v52, %v2461_v2  ;;  %v315_v61 = vstv %s1924_s20  ;;  %s1944_s20 = sld [smem:[#allocation4 + $0x9]] }
  0xad   : > { %648 = vrot.lane.b32.xlu1 %v642_v0, %s2287_s11  ;;  %632 = vrot.lane.b32.xlu0 %v624_v3, %s2287_s11  ;;  %v309_v0 = vmul.f32 %v307_v52, %v2464_v4  ;;  %v406_v3 = vstv %s1929_s21  ;;  %s2000_s21 = sld [smem:[#allocation4 + $0x1c]] }
  0xb1   : > { %668 = vrot.lane.b32.xlu1 %v662_v6, %s2288_s14  ;;  %650 = vrot.lane.b32.xlu0 %v643_v7, %s2287_s11  ;;  %v310_v7 = vmul.f32 %v307_v52, %v2458_v1  ;;  %v684_v52 = vmul.f32 %v2567_v63, %v2628_v37 }
  0xb5   : > { %727 = vrot.lane.b32.xlu1 %v721_v10, %s2287_s11  ;;  %670 = vrot.lane.b32.xlu0 %v663_v11, %s2288_s14  ;;  %v316_v10 = vmul.f32 %v315_v61, %v2461_v2  ;;  %v2674_v11 = vld [vmem:[%s2455_s29 + $0x39] sm:$0xff]  ;;  %v407_v2 = vmul.f32 %v406_v3, %v2492_v21 }
  0xb9   : > { %672 = vrot.lane.b32.xlu1 %v664_v13, %s2288_s14  ;;  %729 = vrot.lane.b32.xlu0 %v722_v14, %s2287_s11  ;;  %v2676_v13 = vstv %s1982_s22  ;;  %v408_v14 = vmul.f32 %v406_v3, %v2489_v19  ;;  %s1945_s22 = sld [smem:[#allocation4 + $0x2d]] }
  0xbd   : > { %769 = vrot.lane.b32.xlu1 %v762_v16, %s2288_s14  ;;  %767 = vrot.lane.b32.xlu0 %v761_v17, %s2288_s14  ;;  %v2680_v17 = vld [vmem:[%s2455_s29 + $0x31] sm:$0xff] }
  0xbe   : > { %v1019_v33 = vmul.f32 %v2680_v17, %v2676_v13 }
  0xc1   : > { %826 = vrot.lane.b32.xlu1 %v820_v23, %s2287_s11  ;;  %731 = vrot.lane.b32.xlu0 %v723_v24, %s2287_s11  ;;  %v318_v23 = vmul.f32 %v315_v61, %v2458_v1  ;;  %v415_v1 = vmul.f32 %v414_v20, %v2492_v21 }
  0xc5   : > { %771 = vrot.lane.b32.xlu1 %v763_v27, %s2288_s14  ;;  %828 = vrot.lane.b32.xlu0 %v821_v28, %s2287_s11  ;;  %v317_v28 = vmul.f32 %v315_v61, %v2464_v4 }
  0xc9   : > { %868 = vrot.lane.b32.xlu1 %v861_v30, %s2288_s14  ;;  %866 = vrot.lane.b32.xlu0 %v860_v31, %s2288_s14  ;;  %v1020_v31 = vmul.f32 %v2674_v11, %v2676_v13 }
  0xcd   : > { %926 = vrot.lane.b32.xlu1 %v920_v35, %s2287_s11  ;;  %830 = vrot.lane.b32.xlu0 %v822_v36, %s2287_s11  ;;  %v2692_v35 = vstv %s2662_s30  ;;  %v409_v36 = vmul.f32 %v406_v3, %v2499_v25  ;;  %s2002_s30 = sld [smem:[#allocation4 + $0x1d]] }
  0xce   : > { %v781_v21 = vmul.f32 %v2580_v8, %v2692_v35 }
  0xd1   : > { %688 = vrot.lane.b32.xlu1 %v682_v41, %s2288_s14  ;;  %928 = vrot.lane.b32.xlu0 %v921_v42, %s2287_s11 }
  0xd3   : > { %v335_v47 = vpop.permute.xlu1 %334  ;;  %v331_v48 = vpop.permute.xlu0 %330 }
  0xd4   : > { %v339_v15 = vadd.f32 %v331_v48, %v308_v60  ;;  %v341_v41 = vadd.f32 %v335_v47, %v310_v7  ;;  %v417_v47 = vmul.f32 %v414_v20, %v2499_v25  ;;  %v962_v7 = vmul.f32 %v2660_v58, %v2643_v46 }
  0xd5   : > { %870 = vrot.lane.b32.xlu1 %v862_v43, %s2288_s14  ;;  %690 = vrot.lane.b32.xlu0 %v683_v45, %s2288_s14  ;;  %v782_v25 = vmul.f32 %v2587_v12, %v2692_v35 }
  0xd7   : > { %v351_v53 = vpop.permute.xlu1 %350  ;;  %v333_v54 = vpop.permute.xlu0 %332 }
  0xd8   : > { %v340_v16 = vadd.f32 %v333_v54, %v309_v0  ;;  %v359_v4 = vadd.f32 %v351_v53, %v316_v10  ;;  %v416_v53 = vmul.f32 %v414_v20, %v2489_v19  ;;  %v2710_v19 = vstv %s1984_s12  ;;  %s1983_s12 = sld [smem:[#allocation4 + $0x3a]] }
  0xd9   : > { %968 = vrot.lane.b32.xlu1 %v961_v49, %s2288_s14  ;;  %966 = vrot.lane.b32.xlu0 %v960_v50, %s2288_s14  ;;  %v1059_v46 = vmul.f32 %v2680_v17, %v2710_v19  ;;  %v743_v20 = vmul.f32 %v2601_v22, %v2651_v51 }
  0xdb   : > { %v355_v5 = vpop.permute.xlu1 %354  ;;  %v353_v6 = vpop.permute.xlu0 %352 }
  0xdc   : > { %v361_v54 = vadd.f32 %v355_v5, %v318_v23  ;;  %v2727_v23 = vld [vmem:[%s2455_s29 + $0x41] sm:$0x3] }
  0xdd   : > { %747 = vrot.lane.b32.xlu1 %v741_v55, %s2287_s11  ;;  %652 = vrot.lane.b32.xlu0 %v644_v56, %s2287_s11  ;;  %v360_v55 = vadd.f32 %v353_v6, %v317_v28 }
  0xdf   : > { %v373_v24 = vpop.permute.xlu1 %372  ;;  %v371_v27 = vpop.permute.xlu0 %370 }
  0xe0   : > { %v380_v29 = vadd.f32 %v373_v24, %v340_v16  ;;  %v379_v30 = vadd.f32 %v371_v27, %v339_v15  ;;  %v505_v24 = vstv %s1935_s15  ;;  %s1985_s15 = sld [smem:[#allocation4 + $0x3b]] }
  0xe1   : > { %930 = vrot.lane.b32.xlu1 %v922_v9, %s2287_s11  ;;  %749 = vrot.lane.b32.xlu0 %v742_v62, %s2287_s11  ;;  %v1060_v62 = vmul.f32 %v2674_v11, %v2710_v19  ;;  %v507_v51 = vmul.f32 %v505_v24, %v2522_v38 }
  0xe2   : > { %v411_v42 = vadd.f32 %v408_v14, %v380_v29  ;;  %v410_v43 = vadd.f32 %v407_v2, %v379_v30  ;;  %v2718_v14 = vstv %s1965_s13  ;;  %v1021_v29 = vmul.f32 %v2727_v23, %v2676_v13  ;;  %s2009_s13 = sld [smem:[#allocation4 + $0x1f]] }
  0xe3   : > { %v391_v45 = vpop.permute.xlu1 %390  ;;  %v375_v48 = vpop.permute.xlu0 %374  ;;  %v840_v2 = vmul.f32 %v2598_v18, %v2718_v14  ;;  %v841_v30 = vmul.f32 %v2608_v26, %v2718_v14 }
  0xe4   : > { %v399_v49 = vadd.f32 %v391_v45, %v359_v4  ;;  %v381_v50 = vadd.f32 %v375_v48, %v341_v41  ;;  %v2742_v41 = vld [vmem:[%s2455_s29 + $0x32] sm:$0xff]  ;;  %v506_v4 = vmul.f32 %v505_v24, %v2525_v40  ;;  %v513_v45 = vstv %s1936_s18  ;;  %s1992_s18 = sld [smem:[#allocation4 + $0x3d]] }
  0xe5   : > { %1027 = vrot.lane.b32.xlu1 %v1020_v31, %s2287_s11  ;;  %1025 = vrot.lane.b32.xlu0 %v1019_v33, %s2287_s11  ;;  %v2736_v31 = vld [vmem:[%s2455_s29 + $0x3a] sm:$0xff]  ;;  %v2738_v33 = vstv %s1991_s16  ;;  %3493 = vst [vmem:[#allocation17_spill] sm:$0xff] %v2742_v41  ;;  %s2011_s16 = sld [smem:[#allocation4 + $0x20]] }
  0xe6   : > { %v418_v56 = vadd.f32 %v415_v1, %v399_v49  ;;  %v412_v60 = vadd.f32 %v409_v36, %v381_v50 }
  0xe7   : > { %v395_v61 = vpop.permute.xlu1 %394  ;;  %v393_v0 = vpop.permute.xlu0 %392 }
  0xe8   : > { %v401_v3 = vadd.f32 %v395_v61, %v361_v54  ;;  %v400_v37 = vadd.f32 %v393_v0, %v360_v55 }
  0xe9   : > { %787 = vrot.lane.b32.xlu1 %v781_v21, %s2288_s14  ;;  %692 = vrot.lane.b32.xlu0 %v684_v52, %s2288_s14  ;;  %v1119_v52 = vmul.f32 %v2736_v31, %v2738_v33  ;;  %v514_v21 = vmul.f32 %v513_v45, %v2525_v40  ;;  %v783_v40 = vmul.f32 %v2601_v22, %v2692_v35 }
  0xea   : > { %v420_v5 = vadd.f32 %v417_v47, %v401_v3  ;;  %v419_v6 = vadd.f32 %v416_v53, %v400_v37  ;;  %v508_v47 = vmul.f32 %v505_v24, %v2532_v44  ;;  %v1061_v35 = vmul.f32 %v2727_v23, %v2710_v19 }
  0xeb   : > { %v432_v9 = vpop.permute.xlu1 %431  ;;  %v430_v10 = vpop.permute.xlu0 %429 }
  0xec   : > { %v439_v1 = vadd.f32 %v432_v9, %v411_v42  ;;  %v438_v36 = vadd.f32 %v430_v10, %v410_v43  ;;  %v1118_v42 = vmul.f32 %v2742_v41, %v2738_v33  ;;  %v2751_v43 = vstv %s1967_s19  ;;  %s1953_s19 = sld [smem:[#allocation4 + $0xc]] }
  0xed   : > { %970 = vrot.lane.b32.xlu1 %v962_v7, %s2288_s14  ;;  %789 = vrot.lane.b32.xlu0 %v782_v25, %s2288_s14  ;;  %v880_v25 = vmul.f32 %v2598_v18, %v2751_v43 }
  0xef   : > { %v450_v15 = vpop.permute.xlu1 %449  ;;  %v434_v16 = vpop.permute.xlu0 %433 }
  0xf0   : > { %v458_v53 = vadd.f32 %v450_v15, %v418_v56  ;;  %v440_v54 = vadd.f32 %v434_v16, %v412_v60  ;;  %v516_v56 = vmul.f32 %v513_v45, %v2532_v44  ;;  %v515_v60 = vmul.f32 %v513_v45, %v2522_v38 }
  0xf1   : > { %1067 = vrot.lane.b32.xlu1 %v1060_v62, %s2288_s14  ;;  %1065 = vrot.lane.b32.xlu0 %v1059_v46, %s2288_s14  ;;  %v881_v44 = vmul.f32 %v2608_v26, %v2751_v43  ;;  %v2769_v38 = vstv %s1993_s10  ;;  %v605_v45 = vstv %s1944_s20  ;;  %s2018_s10 = sld [smem:[#allocation4 + $0x22]] }
  0xf2   : > { %v1158_v19 = vmul.f32 %v2742_v41, %v2769_v38  ;;  %s1962_s20 = sld [smem:[#allocation4 + $0xf]] }
  0xf3   : > { %v454_v27 = vpop.permute.xlu1 %453  ;;  %v452_v28 = vpop.permute.xlu0 %451 }
  0xf4   : > { %v460_v9 = vadd.f32 %v454_v27, %v420_v5  ;;  %v459_v10 = vadd.f32 %v452_v28, %v419_v6  ;;  %v1159_v28 = vmul.f32 %v2736_v31, %v2769_v38 }
  0xf5   : > { %846 = vrot.lane.b32.xlu1 %v840_v2, %s2287_s11  ;;  %751 = vrot.lane.b32.xlu0 %v743_v20, %s2287_s11 }
  0xf7   : > { %v472_v48 = vpop.permute.xlu1 %471  ;;  %v470_v49 = vpop.permute.xlu0 %469 }
  0xf8   : > { %v479_v50 = vadd.f32 %v472_v48, %v439_v1  ;;  %v478_v13 = vadd.f32 %v470_v49, %v438_v36  ;;  %v842_v36 = vmul.f32 %v2622_v34, %v2718_v14  ;;  %v607_v14 = vmul.f32 %v2555_v57, %v605_v45 }
  0xf9   : > { %1029 = vrot.lane.b32.xlu1 %v1021_v29, %s2287_s11  ;;  %848 = vrot.lane.b32.xlu0 %v841_v30, %s2287_s11  ;;  %v2777_v29 = vstv %s1974_s17  ;;  %s1994_s17 = sld [smem:[#allocation4 + $0x3e]] }
  0xfa   : > { %v510_v55 = vadd.f32 %v507_v51, %v479_v50  ;;  %v509_v61 = vadd.f32 %v506_v4, %v478_v13  ;;  %v940_v1 = vmul.f32 %v2619_v32, %v2777_v29  ;;  %v2786_v4 = vld [vmem:[%s2455_s29 + $0x42] sm:$0x3]  ;;  %v941_v13 = vmul.f32 %v2631_v39, %v2777_v29 }
  0xfb   : > { %v490_v0 = vpop.permute.xlu1 %489  ;;  %v474_v3 = vpop.permute.xlu0 %473  ;;  %v1120_v50 = vmul.f32 %v2786_v4, %v2738_v33 }
  0xfc   : > { %v498_v37 = vadd.f32 %v490_v0, %v458_v53  ;;  %v480_v7 = vadd.f32 %v474_v3, %v440_v54  ;;  %v2801_v53 = vld [vmem:[%s2455_s29 + $0x48] sm:$0xff]  ;;  %v606_v54 = vmul.f32 %v2558_v59, %v605_v45  ;;  %v613_v0 = vstv %s1945_s22  ;;  %s1971_s22 = sld [smem:[#allocation4 + $0x12]] }
  0xfd   : > { %1126 = vrot.lane.b32.xlu1 %v1119_v52, %s2287_s11  ;;  %1124 = vrot.lane.b32.xlu0 %v1118_v42, %s2287_s11  ;;  %v2795_v52 = vld [vmem:[%s2455_s29 + $0x50] sm:$0xff]  ;;  %v2797_v42 = vstv %s2000_s21  ;;  %s2020_s21 = sld [smem:[#allocation4 + $0x23]] }
  0xfe   : > { %v517_v62 = vadd.f32 %v514_v21, %v498_v37  ;;  %v511_v46 = vadd.f32 %v508_v47, %v480_v7 }
  0xff   : > { %v494_v15 = vpop.permute.xlu1 %493  ;;  %v492_v16 = vpop.permute.xlu0 %491 }
 0x100   : > { %v500_v2 = vadd.f32 %v494_v15, %v460_v9  ;;  %v499_v20 = vadd.f32 %v492_v16, %v459_v10 }
 0x101   : > { %886 = vrot.lane.b32.xlu1 %v880_v25, %s2288_s14  ;;  %791 = vrot.lane.b32.xlu0 %v783_v40, %s2288_s14  ;;  %v1219_v25 = vmul.f32 %v2795_v52, %v2797_v42  ;;  %v614_v40 = vmul.f32 %v2558_v59, %v613_v0  ;;  %v882_v59 = vmul.f32 %v2622_v34, %v2751_v43  ;;  %v1257_v43 = vstv %s2002_s30  ;;  %s2003_s30 = sld [smem:[#allocation4 + $0x41]] }
 0x102   : > { %v519_v5 = vadd.f32 %v516_v56, %v500_v2  ;;  %v518_v6 = vadd.f32 %v515_v60, %v499_v20  ;;  %v608_v56 = vmul.f32 %v2567_v63, %v605_v45 }
 0x103   : > { %v531_v24 = vpop.permute.xlu1 %530  ;;  %v529_v27 = vpop.permute.xlu0 %528 }
 0x104   : > { %v538_v21 = vadd.f32 %v531_v24, %v510_v55  ;;  %v537_v47 = vadd.f32 %v529_v27, %v509_v61  ;;  %v1218_v55 = vmul.f32 %v2801_v53, %v2797_v42  ;;  %v2810_v61 = vstv %s1976_s27  ;;  %s2001_s27 = sld [smem:[#allocation4 + $0x40]] }
 0x105   : > { %1069 = vrot.lane.b32.xlu1 %v1061_v35, %s2288_s14  ;;  %888 = vrot.lane.b32.xlu0 %v881_v44, %s2288_s14  ;;  %v980_v44 = vmul.f32 %v2619_v32, %v2810_v61 }
 0x107   : > { %v549_v30 = vpop.permute.xlu1 %548  ;;  %v533_v51 = vpop.permute.xlu0 %532 }
 0x108   : > { %v557_v60 = vadd.f32 %v549_v30, %v517_v62  ;;  %v539_v9 = vadd.f32 %v533_v51, %v511_v46  ;;  %v615_v62 = vmul.f32 %v2555_v57, %v613_v0  ;;  %v616_v46 = vmul.f32 %v2567_v63, %v613_v0 }
 0x109   : > { %1166 = vrot.lane.b32.xlu1 %v1159_v28, %s2288_s14  ;;  %1164 = vrot.lane.b32.xlu0 %v1158_v19, %s2288_s14  ;;  %v1160_v57 = vmul.f32 %v2786_v4, %v2769_v38  ;;  %v981_v63 = vmul.f32 %v2631_v39, %v2810_v61  ;;  %v1258_v38 = vmul.f32 %v2801_v53, %v1257_v43 }
 0x10b   : > { %v553_v48 = vpop.permute.xlu1 %552  ;;  %v551_v49 = vpop.permute.xlu0 %550 }
 0x10c   : > { %v559_v24 = vadd.f32 %v553_v48, %v519_v5  ;;  %v558_v27 = vadd.f32 %v551_v49, %v518_v6  ;;  %v1259_v49 = vmul.f32 %v2795_v52, %v1257_v43 }
 0x10d   : > { %946 = vrot.lane.b32.xlu1 %v940_v1, %s2287_s11  ;;  %850 = vrot.lane.b32.xlu0 %v842_v36, %s2287_s11 }
 0x10f   : > { %v571_v3 = vpop.permute.xlu1 %570  ;;  %v569_v37 = vpop.permute.xlu0 %568 }
 0x110   : > { %v578_v7 = vadd.f32 %v571_v3, %v538_v21  ;;  %v577_v33 = vadd.f32 %v569_v37, %v537_v47  ;;  %v942_v47 = vmul.f32 %v2660_v58, %v2777_v29 }
 0x111   : > { %1128 = vrot.lane.b32.xlu1 %v1120_v50, %s2287_s11  ;;  %948 = vrot.lane.b32.xlu0 %v941_v13, %s2287_s11  ;;  %v1038_v50 = vstv %s1983_s12  ;;  %s1954_s12 = sld [smem:[#allocation4 + $0x30]] }
 0x112   : > { %v2814_v10 = vadd.f32 %v607_v14, %v578_v7  ;;  %v2816_v15 = vadd.f32 %v606_v54, %v577_v33  ;;  %v1039_v21 = vmul.f32 %v2680_v17, %v1038_v50  ;;  %v2858_v54 = vld [vmem:[%s2455_s29 + $0x58] sm:$0x3]  ;;  %v1040_v7 = vmul.f32 %v2674_v11, %v1038_v50 }
 0x113   : > { %v589_v16 = vpop.permute.xlu1 %588  ;;  %v573_v2 = vpop.permute.xlu0 %572  ;;  %v1220_v37 = vmul.f32 %v2858_v54, %v2797_v42  ;;  %v2868_v33 = vld [vmem:[%s2455_s29 + $0x51] sm:$0xff] }
 0x114   : > { %v597_v20 = vadd.f32 %v589_v16, %v557_v60  ;;  %v579_v35 = vadd.f32 %v573_v2, %v539_v9  ;;  %3494 = vst [vmem:[#allocation18_spill] sm:$0xff] %v2868_v33  ;;  %v2879_v9 = vstv %s1985_s15  ;;  %s3020_s15 = sld [smem:[#allocation4 + $0x33]] }
 0x115   : > { %1226 = vrot.lane.b32.xlu1 %v1219_v25, %s2287_s11  ;;  %1224 = vrot.lane.b32.xlu0 %v1218_v55, %s2287_s11  ;;  %v1316_v25 = vstv %s2009_s13  ;;  %v2871_v55 = vld [vmem:[%s2455_s29 + $0x49] sm:$0xff]  ;;  %v1079_v2 = vmul.f32 %v2680_v17, %v2879_v9  ;;  %s1980_s13 = sld [smem:[#allocation4 + $0x15]] }
 0x116   : > { %v2826_v28 = vadd.f32 %v614_v40, %v597_v20  ;;  %v2828_v19 = vadd.f32 %v608_v56, %v579_v35  ;;  %v1318_v56 = vmul.f32 %v2868_v33, %v1316_v25  ;;  %v1317_v60 = vmul.f32 %v2871_v55, %v1316_v25 }
 0x117   : > { %v593_v30 = vpop.permute.xlu1 %592  ;;  %v591_v51 = vpop.permute.xlu0 %590  ;;  %v982_v20 = vmul.f32 %v2660_v58, %v2810_v61 }
 0x118   : > { %v599_v1 = vadd.f32 %v593_v30, %v559_v24  ;;  %v598_v36 = vadd.f32 %v591_v51, %v558_v27  ;;  %v2910_v51 = vstv %s1992_s18  ;;  %s3062_s18 = sld [smem:[#allocation4 + $0x18]] }
 0x119   : > { %986 = vrot.lane.b32.xlu1 %v980_v44, %s2288_s14  ;;  %890 = vrot.lane.b32.xlu0 %v882_v59, %s2288_s14  ;;  %v1260_v59 = vmul.f32 %v2858_v54, %v1257_v43  ;;  %v1041_v43 = vmul.f32 %v2727_v23, %v1038_v50 }
 0x11a   : > { %v2836_v5 = vadd.f32 %v615_v62, %v598_v36  ;;  %v2838_v6 = vadd.f32 %v616_v46, %v599_v1  ;;  %v1080_v62 = vmul.f32 %v2674_v11, %v2879_v9  ;;  %v2898_v46 = vstv %s2011_s16  ;;  %s3033_s16 = sld [smem:[#allocation4 + $0x43]] }
 0x11b   : > { %v2840_v45 = vpop.permute.xlu1 %630  ;;  %v2842_v48 = vpop.permute.xlu0 %628  ;;  %v1358_v27 = vmul.f32 %v2868_v33, %v2898_v46  ;;  %v1357_v30 = vmul.f32 %v2871_v55, %v2898_v46 }
 0x11d   : > { %1168 = vrot.lane.b32.xlu1 %v1160_v57, %s2288_s14  ;;  %988 = vrot.lane.b32.xlu0 %v981_v63, %s2288_s14  ;;  %v704_v57 = vstv %s1953_s19  ;;  %v1138_v63 = vmul.f32 %v2742_v41, %v2910_v51  ;;  %s3065_s19 = sld [smem:[#allocation4 + $0x44]] }
 0x11f   : > { %v2848_v13 = vpop.permute.xlu1 %648  ;;  %v2850_v14 = vpop.permute.xlu0 %632 }
 0x121   : > { %1266 = vrot.lane.b32.xlu1 %v1259_v49, %s2288_s14  ;;  %1264 = vrot.lane.b32.xlu0 %v1258_v38, %s2288_s14  ;;  %v2922_v49 = vld [vmem:[%s2455_s29 + $0x59] sm:$0x3]  ;;  %v637_v38 = vadd.f32 %v2842_v48, %v2816_v15  ;;  %v2939_v15 = vstv %s2018_s10  ;;  %s2019_s10 = sld [smem:[#allocation4 + $0x46]] }
 0x122   : > { %v1319_v50 = vmul.f32 %v2922_v49, %v1316_v25  ;;  %v2942_v48 = vld [vmem:[%s2455_s29 + $0x4a] sm:$0xff] }
 0x123   : > { %v669_v0 = vpop.permute.xlu1 %668  ;;  %v2860_v3 = vpop.permute.xlu0 %650 }
 0x125   : > { %1045 = vrot.lane.b32.xlu1 %v1039_v21, %s2287_s11  ;;  %950 = vrot.lane.b32.xlu0 %v942_v47, %s2287_s11 }
 0x127   : > { %v2873_v29 = vpop.permute.xlu1 %727  ;;  %v671_v40 = vpop.permute.xlu0 %670 }
 0x129   : > { %1228 = vrot.lane.b32.xlu1 %v1220_v37, %s2287_s11  ;;  %1047 = vrot.lane.b32.xlu0 %v1040_v7, %s2287_s11  ;;  %v705_v37 = vmul.f32 %v2580_v8, %v704_v57  ;;  %v677_v7 = vadd.f32 %v669_v0, %v637_v38 }
 0x12b   : > { %v2881_v42 = vpop.permute.xlu1 %672  ;;  %v2883_v16 = vpop.permute.xlu0 %729 }
 0x12d   : > { %1325 = vrot.lane.b32.xlu1 %v1318_v56, %s2287_s11  ;;  %1323 = vrot.lane.b32.xlu0 %v1317_v60, %s2287_s11  ;;  %v1139_v56 = vmul.f32 %v2736_v31, %v2910_v51  ;;  %v2937_v60 = vld [vmem:[%s2455_s29 + $0x52] sm:$0xff] }
 0x12e   : > { %v1417_v25 = vmul.f32 %v2937_v60, %v2939_v15 }
 0x12f   : > { %v2891_v35 = vpop.permute.xlu1 %769  ;;  %v768_v44 = vpop.permute.xlu0 %767 }
 0x131   : > { %1085 = vrot.lane.b32.xlu1 %v1079_v2, %s2288_s14  ;;  %990 = vrot.lane.b32.xlu0 %v982_v20, %s2288_s14  ;;  %v638_v2 = vadd.f32 %v2840_v45, %v2814_v10 }
 0x133   : > { %v2900_v24 = vpop.permute.xlu1 %826  ;;  %v2902_v61 = vpop.permute.xlu0 %731 }
 0x135   : > { %1268 = vrot.lane.b32.xlu1 %v1260_v59, %s2288_s14  ;;  %1087 = vrot.lane.b32.xlu0 %v1080_v62, %s2288_s14  ;;  %v706_v59 = vmul.f32 %v2587_v12, %v704_v57  ;;  %v708_v62 = vadd.f32 %v705_v37, %v677_v7  ;;  %v1081_v7 = vmul.f32 %v2727_v23, %v2879_v9  ;;  %v2986_v9 = vstv %s2020_s21  ;;  %s1998_s21 = sld [smem:[#allocation4 + $0x1b]] }
 0x137   : > { %v2912_v1 = vpop.permute.xlu1 %771  ;;  %v2914_v36 = vpop.permute.xlu0 %828 }
 0x139   : > { %1365 = vrot.lane.b32.xlu1 %v1358_v27, %s2288_s14  ;;  %1363 = vrot.lane.b32.xlu0 %v1357_v30, %s2288_s14  ;;  %v678_v27 = vadd.f32 %v671_v40, %v638_v2  ;;  %v1416_v30 = vmul.f32 %v2942_v48, %v2939_v15  ;;  %v736_v40 = vadd.f32 %v2873_v29, %v708_v62 }
 0x13b   : > { %v2926_v21 = vpop.permute.xlu1 %868  ;;  %v2928_v47 = vpop.permute.xlu0 %866  ;;  %v709_v37 = vadd.f32 %v706_v59, %v678_v27  ;;  %v707_v59 = vmul.f32 %v2601_v22, %v704_v57 }
 0x13d   : > { %1144 = vrot.lane.b32.xlu1 %v1138_v63, %s2287_s11  ;;  %1049 = vrot.lane.b32.xlu0 %v1041_v43, %s2287_s11  ;;  %v2957_v63 = vstv %s1994_s17  ;;  %v803_v43 = vstv %s1962_s20  ;;  %s2021_s17 = sld [smem:[#allocation4 + $0x47]] }
 0x13e   : > { %v1178_v38 = vmul.f32 %v2742_v41, %v2957_v63  ;;  %v804_v2 = vmul.f32 %v2598_v18, %v803_v43  ;;  %s1972_s20 = sld [smem:[#allocation4 + $0x36]] }
 0x13f   : > { %v2946_v20 = vpop.permute.xlu1 %926  ;;  %v2948_v0 = vpop.permute.xlu0 %830 }
 0x141   : > { %1327 = vrot.lane.b32.xlu1 %v1319_v50, %s2287_s11  ;;  %1146 = vrot.lane.b32.xlu0 %v1139_v56, %s2287_s11  ;;  %v639_v50 = vadd.f32 %v2850_v14, %v2828_v19  ;;  %v776_v56 = vadd.f32 %v768_v44, %v736_v40  ;;  %v1359_v19 = vmul.f32 %v2922_v49, %v2898_v46  ;;  %v2996_v40 = vstv %s2001_s27  ;;  %s2016_s27 = sld [smem:[#allocation4 + $0x21]] }
 0x142   : > { %v1179_v14 = vmul.f32 %v2736_v31, %v2957_v63  ;;  %v1457_v46 = vmul.f32 %v2937_v60, %v2986_v9 }
 0x143   : > { %v2959_v10 = vpop.permute.xlu1 %688  ;;  %v2961_v45 = vpop.permute.xlu0 %928  ;;  %v679_v29 = vadd.f32 %v2881_v42, %v639_v50  ;;  %v807_v62 = vadd.f32 %v804_v2, %v776_v56  ;;  %v805_v42 = vmul.f32 %v2608_v26, %v803_v43 }
 0x145   : > { %1424 = vrot.lane.b32.xlu1 %v1417_v25, %s2287_s11  ;;  %1422 = vrot.lane.b32.xlu0 %v1416_v30, %s2287_s11  ;;  %v737_v25 = vadd.f32 %v2883_v16, %v709_v37  ;;  %v710_v16 = vadd.f32 %v707_v59, %v679_v29  ;;  %v903_v30 = vstv %s1971_s22  ;;  %v835_v37 = vadd.f32 %v2900_v24, %v807_v62  ;;  %s2007_s22 = sld [smem:[#allocation4 + $0x1e]] }
 0x146   : > { %v904_v29 = vmul.f32 %v2619_v32, %v903_v30  ;;  %v806_v59 = vmul.f32 %v2622_v34, %v803_v43  ;;  %v1140_v24 = vmul.f32 %v2786_v4, %v2910_v51  ;;  %v905_v34 = vmul.f32 %v2631_v39, %v903_v30 }
 0x147   : > { %v2973_v33 = vpop.permute.xlu1 %870  ;;  %v2975_v41 = vpop.permute.xlu0 %690  ;;  %v777_v44 = vadd.f32 %v2891_v35, %v737_v25  ;;  %v738_v35 = vadd.f32 %v2902_v61, %v710_v16  ;;  %v1238_v25 = vmul.f32 %v2801_v53, %v2996_v40  ;;  %v1239_v51 = vmul.f32 %v2795_v52, %v2996_v40 }
 0x148   : > { %v3028_v62 = vstv %s2003_s30  ;;  %v658_v39 = vadd.f32 %v2860_v3, %v2836_v5  ;;  %s1981_s30 = sld [smem:[#allocation4 + $0x39]] }
 0x149   : > { %1184 = vrot.lane.b32.xlu1 %v1178_v38, %s2288_s14  ;;  %1089 = vrot.lane.b32.xlu0 %v1081_v7, %s2288_s14  ;;  %v1456_v38 = vmul.f32 %v2942_v48, %v2986_v9  ;;  %v808_v7 = vadd.f32 %v805_v42, %v777_v44  ;;  %v778_v2 = vadd.f32 %v2912_v1, %v738_v35  ;;  %v712_v42 = vstv %s1954_s12  ;;  %s1990_s12 = sld [smem:[#allocation4 + $0x3c]] }
 0x14a   : > { %v1002_v35 = vstv %s1980_s13  ;;  %v698_v5 = vadd.f32 %v2975_v41, %v658_v39  ;;  %v1278_v3 = vmul.f32 %v2801_v53, %v3028_v62  ;;  %s1517_s13 = sld [smem:[#allocation7]] }
 0x14b   : > { %v969_v57 = vpop.permute.xlu1 %968  ;;  %v967_v27 = vpop.permute.xlu0 %966  ;;  %v836_v61 = vadd.f32 %v2914_v36, %v808_v7  ;;  %v809_v44 = vadd.f32 %v806_v59, %v778_v2  ;;  %v657_v7 = vadd.f32 %v2848_v13, %v2826_v28  ;;  %v713_v13 = vmul.f32 %v2580_v8, %v712_v42 }
 0x14d   : > { %1367 = vrot.lane.b32.xlu1 %v1359_v19, %s2288_s14  ;;  %1186 = vrot.lane.b32.xlu0 %v1179_v14, %s2288_s14  ;;  %v875_v19 = vadd.f32 %v2928_v47, %v835_v37  ;;  %v3016_v14 = vld [vmem:[%s2455_s29 + $0x5a] sm:$0x3]  ;;  %v876_v32 = vadd.f32 %v2926_v21, %v836_v61  ;;  %v837_v21 = vadd.f32 %v2948_v0, %v809_v44  ;;  %v3054_v61 = vstv %s3020_s15  ;;  %s3182_s15 = sld [smem:[#allocation9]] }
 0x14e   : > { %v1418_v47 = vmul.f32 %v3016_v14, %v2939_v15  ;;  %v697_v28 = vadd.f32 %v2959_v10, %v657_v7  ;;  %v1458_v8 = vmul.f32 %v3016_v14, %v2986_v9 }
 0x14f   : > { %v3000_v50 = vpop.permute.xlu1 %747  ;;  %v3002_v56 = vpop.permute.xlu0 %652  ;;  %v907_v36 = vadd.f32 %v904_v29, %v875_v19  ;;  %v908_v16 = vadd.f32 %v905_v34, %v876_v32  ;;  %v877_v2 = vadd.f32 %v2973_v33, %v837_v21  ;;  %v812_v34 = vmul.f32 %v2598_v18, %v3054_v61 }
 0x150   : > { %v659_v44 = vadd.f32 %v3002_v56, %v2838_v6 }
 0x151   : > { %1464 = vrot.lane.b32.xlu1 %v1457_v46, %s2288_s14  ;;  %1462 = vrot.lane.b32.xlu0 %v1456_v38, %s2288_s14  ;;  %v906_v46 = vmul.f32 %v2660_v58, %v903_v30  ;;  %v714_v38 = vmul.f32 %v2587_v12, %v712_v42  ;;  %v935_v0 = vadd.f32 %v2946_v20, %v907_v36 }
 0x152   : > { %v936_v58 = vadd.f32 %v2961_v45, %v908_v16  ;;  %v1180_v12 = vmul.f32 %v2786_v4, %v2957_v63  ;;  %v1004_v30 = vmul.f32 %v2674_v11, %v1002_v35  ;;  %v1003_v20 = vmul.f32 %v2680_v17, %v1002_v35 }
 0x153   : > { %v931_v1 = vpop.permute.xlu1 %930  ;;  %v750_v43 = vpop.permute.xlu0 %749  ;;  %v975_v33 = vadd.f32 %v967_v27, %v935_v0  ;;  %v909_v59 = vadd.f32 %v906_v46, %v877_v2  ;;  %v1279_v63 = vmul.f32 %v2795_v52, %v3028_v62  ;;  %v716_v11 = vadd.f32 %v713_v13, %v697_v28  ;;  %v3496_v13 = vld [vmem:[#allocation17_spill] sm:$0xff] }
 0x154   : > { %v976_v41 = vadd.f32 %v969_v57, %v936_v58  ;;  %v1336_v57 = vstv %s3033_s16  ;;  %v1376_v2 = vstv %s3065_s19  ;;  %s3221_s16 = sld [smem:[#allocation4 + $0x3f]] }
 0x155   : > { %1244 = vrot.lane.b32.xlu1 %v1238_v25, %s2287_s11  ;;  %1148 = vrot.lane.b32.xlu0 %v1140_v24, %s2287_s11  ;;  %v717_v25 = vadd.f32 %v714_v38, %v698_v5  ;;  %v937_v17 = vadd.f32 %v931_v1, %v909_v59  ;;  %v1006_v19 = vadd.f32 %v1003_v20, %v975_v33  ;;  %v3088_v5 = vstv %s3062_s18  ;;  %s3252_s18 = sld [smem:[#allocation10 + $0x1]] }
 0x156   : > { %v1007_v27 = vadd.f32 %v1004_v30, %v976_v41  ;;  %v756_v9 = vadd.f32 %v3000_v50, %v716_v11  ;;  %v1337_v1 = vmul.f32 %v2871_v55, %v1336_v57  ;;  %v1005_v38 = vmul.f32 %v2727_v23, %v1002_v35  ;;  %s2008_s19 = sld [smem:[#allocation4 + $0x42]] }
 0x157   : > { %v1028_v15 = vpop.permute.xlu1 %1027  ;;  %v1026_v37 = vpop.permute.xlu0 %1025  ;;  %v757_v10 = vadd.f32 %v750_v43, %v717_v25  ;;  %v1240_v43 = vmul.f32 %v2858_v54, %v2996_v40  ;;  %v3495_v40 = vld [vmem:[#allocation18_spill] sm:$0xff]  ;;  %v1377_v58 = vmul.f32 %v2871_v55, %v1376_v2  ;;  %v1102_v41 = vmul.f32 %v3496_v13, %v3088_v5 }
 0x158   : > { %v1035_v39 = vadd.f32 %v1028_v15, %v1007_v27  ;;  %v1034_v18 = vadd.f32 %v1026_v37, %v1006_v19  ;;  %v813_v15 = vmul.f32 %v2608_v26, %v3054_v61  ;;  %v1103_v26 = vmul.f32 %v2736_v31, %v3088_v5 }
 0x159   : > { %1426 = vrot.lane.b32.xlu1 %v1418_v47, %s2287_s11  ;;  %1246 = vrot.lane.b32.xlu0 %v1239_v51, %s2287_s11  ;;  %v715_v51 = vmul.f32 %v2601_v22, %v712_v42  ;;  %v1280_v22 = vmul.f32 %v2858_v54, %v3028_v62  ;;  %v1338_v42 = vmul.f32 %v3495_v40, %v1336_v57  ;;  %v1435_v33 = vstv %s2019_s10  ;;  %s3278_s10 = sld [smem:[#allocation10 + $0x4]] }
 0x15a   : > { %v1378_v62 = vmul.f32 %v3495_v40, %v1376_v2  ;;  %v1436_v59 = vmul.f32 %v2942_v48, %v1435_v33  ;;  %v1339_v25 = vmul.f32 %v2922_v49, %v1336_v57  ;;  %v1379_v27 = vmul.f32 %v2922_v49, %v1376_v2 }
 0x15b   : > { %v788_v29 = vpop.permute.xlu1 %787  ;;  %v693_v45 = vpop.permute.xlu0 %692  ;;  %v1437_v19 = vmul.f32 %v2937_v60, %v1435_v33 }
 0x15c   : > { %v796_v50 = vadd.f32 %v788_v29, %v756_v9  ;;  %v699_v21 = vadd.f32 %v693_v45, %v659_v44 }
 0x15d   : > { %1284 = vrot.lane.b32.xlu1 %v1278_v3, %s2288_s14  ;;  %1188 = vrot.lane.b32.xlu0 %v1180_v12, %s2288_s14 }
 0x15e   : > { %v815_v37 = vadd.f32 %v812_v34, %v796_v50  ;;  %v718_v7 = vadd.f32 %v715_v51, %v699_v21  ;;  %v2140_v21 = vld [vmem:[%s2455_s29 + $0x30] sm:$0xff] }
 0x15f   : > { %v971_v24 = vpop.permute.xlu1 %970  ;;  %v790_v32 = vpop.permute.xlu0 %789 }
 0x160   : > { %v977_v36 = vadd.f32 %v971_v24, %v937_v17  ;;  %v797_v47 = vadd.f32 %v790_v32, %v757_v10  ;;  %v1475_v24 = vstv %s2021_s17  ;;  %s3299_s17 = sld [smem:[#allocation10 + $0x5]] }
 0x161   : > { %1466 = vrot.lane.b32.xlu1 %v1458_v8, %s2288_s14  ;;  %1286 = vrot.lane.b32.xlu0 %v1279_v63, %s2288_s14  ;;  %v1477_v44 = vmul.f32 %v2937_v60, %v1475_v24  ;;  %v1478_v50 = vmul.f32 %v3016_v14, %v1475_v24 }
 0x162   : > { %v1008_v12 = vadd.f32 %v1005_v38, %v977_v36  ;;  %v816_v28 = vadd.f32 %v813_v15, %v797_v47  ;;  %v1476_v36 = vmul.f32 %v2942_v48, %v1475_v24  ;;  %v2142_v15 = vld [vmem:[%s2455_s29 + $0x38] sm:$0xff] }
 0x163   : > { %v1068_v6 = vpop.permute.xlu1 %1067  ;;  %v1066_v56 = vpop.permute.xlu0 %1065 }
 0x164   : > { %v1075_v16 = vadd.f32 %v1068_v6, %v1035_v39  ;;  %v1074_v46 = vadd.f32 %v1066_v56, %v1034_v18  ;;  %v1438_v18 = vmul.f32 %v3016_v14, %v1435_v33  ;;  %v2141_v56 = vld [vmem:[%s2455_s29 + $0x2a] sm:$0x3] }
 0x165   : > { %1343 = vrot.lane.b32.xlu1 %v1337_v1, %s2287_s11  ;;  %1248 = vrot.lane.b32.xlu0 %v1240_v43, %s2287_s11  ;;  %v3114_v43 = vstv %s1972_s20  ;;  %s3304_s20 = sld [smem:[#allocation4 + $0x45]] }
 0x166   : > { %v1106_v31 = vadd.f32 %v1103_v26, %v1075_v16  ;;  %v1105_v8 = vadd.f32 %v1102_v41, %v1074_v46  ;;  %v912_v6 = vmul.f32 %v2140_v21, %v3114_v43  ;;  %v814_v16 = vmul.f32 %v2141_v56, %v3054_v61 }
 0x167   : > { %v847_v3 = vpop.permute.xlu1 %846  ;;  %v752_v0 = vpop.permute.xlu0 %751  ;;  %v1300_v21 = vstv %s2007_s22  ;;  %s3333_s22 = sld [smem:[#allocation10 + $0x8]] }
 0x168   : > { %v855_v23 = vadd.f32 %v847_v3, %v815_v37  ;;  %v758_v35 = vadd.f32 %v752_v0, %v718_v7  ;;  %v913_v37 = vmul.f32 %v2142_v15, %v3114_v43 }
 0x169   : > { %1288 = vrot.lane.b32.xlu1 %v1280_v22, %s2288_s14  ;;  %1345 = vrot.lane.b32.xlu0 %v1338_v42, %s2287_s11 }
 0x16b   : > { %v1030_v30 = vpop.permute.xlu1 %1029  ;;  %v849_v20 = vpop.permute.xlu0 %848 }
 0x16c   : > { %v1036_v29 = vadd.f32 %v1030_v30, %v1008_v12  ;;  %v856_v45 = vadd.f32 %v849_v20, %v816_v28 }
 0x16d   : > { %1385 = vrot.lane.b32.xlu1 %v1378_v62, %s2288_s14  ;;  %1383 = vrot.lane.b32.xlu0 %v1377_v58, %s2288_s14 }
 0x16f   : > { %v1127_v63 = vpop.permute.xlu1 %1126  ;;  %v1125_v11 = vpop.permute.xlu0 %1124 }
 0x170   : > { %v3102_v17 = vadd.f32 %v1127_v63, %v1106_v31  ;;  %v3104_v10 = vadd.f32 %v1125_v11, %v1105_v8 }
 0x171   : > { %1442 = vrot.lane.b32.xlu1 %v1436_v59, %s2287_s11  ;;  %1347 = vrot.lane.b32.xlu0 %v1339_v25, %s2287_s11 }
 0x173   : > { %v887_v32 = vpop.permute.xlu1 %886  ;;  %v792_v57 = vpop.permute.xlu0 %791 }
 0x174   : > { %v895_v34 = vadd.f32 %v887_v32, %v855_v23  ;;  %v798_v9 = vadd.f32 %v792_v57, %v758_v35  ;;  %v1201_v32 = vstv %s1998_s21  ;;  %s3321_s21 = sld [smem:[#allocation10 + $0x7]] }
 0x175   : > { %1387 = vrot.lane.b32.xlu1 %v1379_v27, %s2288_s14  ;;  %1444 = vrot.lane.b32.xlu0 %v1437_v19, %s2287_s11 }
 0x176   : > { %v915_v22 = vadd.f32 %v912_v6, %v895_v34  ;;  %v817_v42 = vadd.f32 %v814_v16, %v798_v9  ;;  %v1104_v16 = vmul.f32 %v2786_v4, %v3088_v5 }
 0x177   : > { %v1070_v47 = vpop.permute.xlu1 %1069  ;;  %v889_v1 = vpop.permute.xlu0 %888 }
 0x178   : > { %v3116_v51 = vadd.f32 %v1070_v47, %v1036_v29  ;;  %v896_v39 = vadd.f32 %v889_v1, %v856_v45  ;;  %v1202_v47 = vmul.f32 %v2801_v53, %v1201_v32 }
 0x179   : > { %1484 = vrot.lane.b32.xlu1 %v1477_v44, %s2288_s14  ;;  %1482 = vrot.lane.b32.xlu0 %v1476_v36, %s2288_s14  ;;  %v1203_v36 = vmul.f32 %v2795_v52, %v1201_v32 }
 0x17a   : > { %v916_v23 = vadd.f32 %v913_v37, %v896_v39 }
 0x17b   : > { %v1167_v46 = vpop.permute.xlu1 %1166  ;;  %v1165_v38 = vpop.permute.xlu0 %1164 }
 0x17c   : > { %v1174_v9 = vadd.f32 %v1167_v46, %v3102_v17  ;;  %v1173_v44 = vadd.f32 %v1165_v38, %v3104_v10 }
 0x17d   : > { %1446 = vrot.lane.b32.xlu0 %v1438_v18, %s2287_s11  ;;  %1486 = vrot.lane.b32.xlu1 %v1478_v50, %s2288_s14 }
 0x17e   : > { %v1206_v18 = vadd.f32 %v1203_v36, %v1174_v9  ;;  %v1205_v50 = vadd.f32 %v1202_v47, %v1173_v44 }
 0x17f   : > { %v947_v7 = vpop.permute.xlu1 %946  ;;  %v851_v2 = vpop.permute.xlu0 %850 }
 0x180   : > { %v955_v3 = vadd.f32 %v947_v7, %v915_v22  ;;  %v857_v0 = vadd.f32 %v851_v2, %v817_v42  ;;  %v1302_v22 = vmul.f32 %v3495_v40, %v1300_v21  ;;  %v1301_v42 = vmul.f32 %v2871_v55, %v1300_v21 }
 0x181   : > { %v1107_v7 = vadd.f32 %v1104_v16, %v3116_v51 }
 0x183   : > { %v1129_v35 = vpop.permute.xlu1 %1128  ;;  %v949_v62 = vpop.permute.xlu0 %948 }
 0x184   : > { %v3130_v58 = vadd.f32 %v949_v62, %v916_v23  ;;  %v1135_v5 = vadd.f32 %v1129_v35, %v1107_v7 }
 0x187   : > { %v1227_v61 = vpop.permute.xlu1 %1226  ;;  %v1225_v26 = vpop.permute.xlu0 %1224 }
 0x188   : > { %v1234_v6 = vadd.f32 %v1227_v61, %v1206_v18  ;;  %v1233_v56 = vadd.f32 %v1225_v26, %v1205_v50  ;;  %v1204_v61 = vmul.f32 %v2858_v54, %v1201_v32 }
 0x18b   : > { %v987_v12 = vpop.permute.xlu1 %986  ;;  %v891_v28 = vpop.permute.xlu0 %890 }
 0x18c   : > { %v3132_v13 = vadd.f32 %v987_v12, %v955_v3  ;;  %v3134_v41 = vadd.f32 %v891_v28, %v857_v0  ;;  %v3171_v0 = vstv %s2016_s27  ;;  %s2022_s27 = sld [smem:[#allocation7 + $0x1]] }
 0x18d   : > { %v1401_v26 = vmul.f32 %v2937_v60, %v3171_v0 }
 0x18f   : > { %v1169_v33 = vpop.permute.xlu1 %1168  ;;  %v3136_v30 = vpop.permute.xlu0 %988 }
 0x190   : > { %v1175_v51 = vadd.f32 %v1169_v33, %v1135_v5  ;;  %v996_v7 = vadd.f32 %v3136_v30, %v3130_v58  ;;  %v3210_v58 = vstv %s3182_s15  ;;  %s2036_s15 = sld [smem:[#allocation10 + $0xd]] }
 0x192   : > { %v1207_v47 = vadd.f32 %v1204_v61, %v1175_v51  ;;  %v1567_v61 = vstv %s3252_s18  ;;  %s2039_s18 = sld [smem:[#allocation10 + $0x10]] }
 0x193   : > { %v1267_v20 = vpop.permute.xlu1 %1266  ;;  %v1265_v29 = vpop.permute.xlu0 %1264 }
 0x194   : > { %v1274_v46 = vadd.f32 %v1267_v20, %v1234_v6  ;;  %v1273_v38 = vadd.f32 %v1265_v29, %v1233_v56  ;;  %v1494_v20 = vlaneseq  ;;  %v2145_v56 = vld [vmem:[%s2455_s29 + $0x39] sm:$0xff] }
 0x196   : > { %v1305_v2 = vadd.f32 %v1302_v22, %v1274_v46  ;;  %v1304_v3 = vadd.f32 %v1301_v42, %v1273_v38  ;;  %v3188_v44 = vand.u32 127, %v1494_v20  ;;  %v3190_v36 = vshrl.u32 %v1494_v20, 7 }
 0x197   : > { %v3138_v45 = vpop.permute.xlu1 %1045  ;;  %v3140_v59 = vpop.permute.xlu0 %950  ;;  %v3197_v38 = vstv %s1990_s12  ;;  %s2033_s12 = sld [smem:[#allocation10 + $0xa]] }
 0x198   : > { %vm1509_vm0 = vcmp.ge.s32.totalorder %v3188_v44, 1  ;;  %vm1500_vm1 = vcmp.ge.s32.totalorder %v3190_v36, 1  ;;  %vm1513_vm2 = vcmp.le.s32.totalorder %v3188_v44, 16 }
 0x199   : > { %vm3216_vm3 = vmand %vm1500_vm1, %vm1509_vm0 }
 0x19a   : > { %vm3235_vm4 = vmand %vm1509_vm0, %vm1513_vm2 }
 0x19b   : > { %v3142_v25 = vpop.permute.xlu1 %1228  ;;  %v3144_v31 = vpop.permute.xlu0 %1047  ;;  %vm3248_vm6 = vmand %vm3216_vm3, %vm1513_vm2 }
 0x19c   : > { %v1235_v46 = vadd.f32 %v3142_v25, %v1207_v47  ;;  %v1303_v25 = vmul.f32 %v2922_v49, %v1300_v21 }
 0x19f   : > { %v1326_v8 = vpop.permute.xlu1 %1325  ;;  %v1324_v63 = vpop.permute.xlu0 %1323 }
 0x1a0   : > { %v1333_v23 = vadd.f32 %v1326_v8, %v1305_v2  ;;  %v1332_v62 = vadd.f32 %v1324_v63, %v1304_v3  ;;  %v1400_v8 = vmul.f32 %v2942_v48, %v3171_v0  ;;  %v1010_v63 = vstv %s1981_s30  ;;  %s2023_s30 = sld [smem:[#allocation9 + $0x1]] }
 0x1a1   : > { %v1012_v16 = vmul.f32 %v2145_v56, %v1010_v63  ;;  %v3202_v2 = vstv %s1517_s13  ;;  %v2148_v56 = vld [vmem:[%s2455_s29 + $0x3a] sm:$0xff]  ;;  %s2034_s13 = sld [smem:[#allocation10 + $0xb]] }
 0x1a3   : > { %v3146_v11 = vpop.permute.xlu1 %1085  ;;  %v3148_v27 = vpop.permute.xlu0 %990  ;;  %v1015_v21 = vadd.f32 %v1012_v16, %v996_v7  ;;  %v1402_v16 = vmul.f32 %v3016_v14, %v3171_v0 }
 0x1a7   : > { %v3150_v19 = vpop.permute.xlu1 %1268  ;;  %v3152_v24 = vpop.permute.xlu0 %1087 }
 0x1a8   : > { %v1275_v5 = vadd.f32 %v3150_v19, %v1235_v46 }
 0x1ab   : > { %v1366_v57 = vpop.permute.xlu1 %1365  ;;  %v1364_v34 = vpop.permute.xlu0 %1363 }
 0x1ac   : > { %v1373_v29 = vadd.f32 %v1366_v57, %v1333_v23  ;;  %v1372_v35 = vadd.f32 %v1364_v34, %v1332_v62  ;;  %v2143_v57 = vld [vmem:[%s2455_s29 + $0x31] sm:$0xff]  ;;  %v2144_v34 = vld [vmem:[%s2455_s29 + $0x40] sm:$0x3] }
 0x1ad   : > { %v1011_v50 = vmul.f32 %v2143_v57, %v1010_v63  ;;  %v914_v6 = vmul.f32 %v2144_v34, %v3114_v43  ;;  %v2147_v57 = vld [vmem:[%s2455_s29 + $0x41] sm:$0x3] }
 0x1ae   : > { %v1404_v18 = vadd.f32 %v1401_v26, %v1373_v29  ;;  %v1403_v33 = vadd.f32 %v1400_v8, %v1372_v35  ;;  %v2146_v26 = vld [vmem:[%s2455_s29 + $0x32] sm:$0xff]  ;;  %v1306_v35 = vadd.f32 %v1303_v25, %v1275_v5  ;;  %s3269_s29 = sld [smem:[#allocation10 + $0x2]] }
 0x1af   : > { %v3158_v1 = vpop.permute.xlu1 %1144  ;;  %v3160_v39 = vpop.permute.xlu0 %1049  ;;  %v917_v30 = vadd.f32 %v914_v6, %v3134_v41  ;;  %v1110_v20 = vmul.f32 %v2146_v26, %v3197_v38 }
 0x1b1   : > { %v957_v29 = vadd.f32 %v3140_v59, %v917_v30  ;;  %v1013_v59 = vmul.f32 %v2147_v57, %v1010_v63  ;;  %v1111_v63 = vmul.f32 %v2148_v56, %v3197_v38 }
 0x1b3   : > { %v3164_v17 = vpop.permute.xlu1 %1327  ;;  %v3166_v10 = vpop.permute.xlu0 %1146  ;;  %v997_v34 = vadd.f32 %v3148_v27, %v957_v29 }
 0x1b4   : > { %v1334_v6 = vadd.f32 %v3164_v17, %v1306_v35 }
 0x1b5   : > { %v1016_v0 = vadd.f32 %v1013_v59, %v997_v34 }
 0x1b7   : > { %v1425_v15 = vpop.permute.xlu1 %1424  ;;  %v1423_v37 = vpop.permute.xlu0 %1422 }
 0x1b8   : > { %v1432_v22 = vadd.f32 %v1425_v15, %v1404_v18  ;;  %v1431_v42 = vadd.f32 %v1423_v37, %v1403_v33  ;;  %v1014_v15 = vadd.f32 %v1011_v50, %v3132_v13  ;;  %v1055_v18 = vadd.f32 %v3144_v31, %v1015_v21 }
 0x1ba   : > { %v1054_v13 = vadd.f32 %v3138_v45, %v1014_v15 }
 0x1bb   : > { %v3176_v12 = vpop.permute.xlu1 %1184  ;;  %v3178_v28 = vpop.permute.xlu0 %1089 }
 0x1bc   : > { %v1094_v33 = vadd.f32 %v3146_v11, %v1054_v13 }
 0x1bf   : > { %v3184_v32 = vpop.permute.xlu1 %1367  ;;  %v3186_v9 = vpop.permute.xlu0 %1186 }
 0x1c0   : > { %v1374_v7 = vadd.f32 %v3184_v32, %v1334_v6  ;;  %v1497_v32 = vadd.s32 16, %v3190_v36 }
 0x1c2   : > { %v1405_v15 = vadd.f32 %v1402_v16, %v1374_v7  ;;  %vm1505_vm7 = vcmp.le.s32.totalorder %v1497_v32, 16 }
 0x1c3   : > { %v1465_v3 = vpop.permute.xlu1 %1464  ;;  %v1463_v43 = vpop.permute.xlu0 %1462  ;;  %vm3293_vm8 = vmand %vm1505_vm7, %vm1509_vm0 }
 0x1c4   : > { %v1472_v23 = vadd.f32 %v1465_v3, %v1432_v22  ;;  %v1471_v62 = vadd.f32 %v1463_v43, %v1431_v42  ;;  %v1095_v42 = vadd.f32 %v3152_v24, %v1055_v18  ;;  %v1113_v3 = vadd.f32 %v1110_v20, %v1094_v33  ;;  %vm3313_vm10 = vmand %vm3293_vm8, %vm1513_vm2 }
 0x1c5   : > { %v1209_v43 = vstv %s3221_s16  ;;  %s2037_s16 = sld [smem:[#allocation10 + $0xe]] }
 0x1c6   : > { %v1520_v37 = vmul.f32 %v3202_v2, %v1472_v23  ;;  %v1519_v19 = vmul.f32 %v3202_v2, %v1471_v62  ;;  %v1153_v25 = vadd.f32 %v3158_v1, %v1113_v3  ;;  %v1056_v23 = vadd.f32 %v3160_v39, %v1016_v0 }
 0x1c7   : > { %v3226_v41 = vpop.permute.xlu1 %1244  ;;  %v3228_v51 = vpop.permute.xlu0 %1148  ;;  %v1114_v62 = vadd.f32 %v1111_v63, %v1095_v42  ;;  %v1210_v30 = vmul.f32 %v2801_v53, %v1209_v43  ;;  %v1211_v53 = vmul.f32 %v2795_v52, %v1209_v43  ;;  %v1212_v6 = vmul.f32 %v2858_v54, %v1209_v43 }
 0x1c8   : > { %v1525_v45 = vadd.f32 %v3210_v58, %v1520_v37  ;;  %v1524_v47 = vadd.f32 %v3210_v58, %v1519_v19  ;;  %v1112_v37 = vmul.f32 %v2786_v4, %v3197_v38  ;;  %v1193_v13 = vadd.f32 %v3176_v12, %v1153_v25 }
 0x1c9   : > { %v1154_v19 = vadd.f32 %v3166_v10, %v1114_v62  ;;  %v1096_v36 = vadd.f32 %v3178_v28, %v1056_v23  ;;  %v1308_v4 = vstv %s2008_s19  ;;  %v1617_v3 = vstv %s3299_s17  ;;  %s2040_s19 = sld [smem:[#allocation10 + $0x11]] }
 0x1ca   : > { %v1528_v31 = vmax.f32 %v1525_v45, 0.0  ;;  %v1527_v11 = vmax.f32 %v1524_v47, 0.0  ;;  %v1213_v28 = vadd.f32 %v1210_v30, %v1193_v13  ;;  %v1309_v47 = vmul.f32 %v2871_v55, %v1308_v4  ;;  %s2029_s17 = sld [smem:[#allocation10 + $0x6]] }
 0x1cb   : > { %v1427_v46 = vpop.permute.xlu1 %1426  ;;  %v1247_v22 = vpop.permute.xlu0 %1246  ;;  %v1194_v26 = vadd.f32 %v3186_v9, %v1154_v19  ;;  %v1115_v35 = vadd.f32 %v1112_v37, %v1096_v36  ;;  %v1581_v9 = vstv %s3269_s29  ;;  %v1310_v7 = vmul.f32 %v3495_v40, %v1308_v4  ;;  %s1560_s29 = sld [smem:[#allocation10]] }
 0x1cc   : > { %v1531_v27 = vsel %vm3235_vm4, %v1528_v31, 0.0  ;;  %v1530_v17 = vsel %vm3248_vm6, %v1527_v11, 0.0  ;;  %v1433_v21 = vadd.f32 %v1427_v46, %v1405_v15  ;;  %v1253_v57 = vadd.f32 %v3226_v41, %v1213_v28 }
 0x1cd   : > { %1535 = vst.msk [vmem:[#allocation2 + $0x8] sm:$0xff] %vm1533_vm5, %v1531_v27  ;;  %1534 = vst.msk [vmem:[#allocation2] sm:$0xff] %vm1533_vm5, %v1530_v17  ;;  %v1155_v59 = vadd.f32 %v3228_v51, %v1115_v35  ;;  %v1603_v41 = vstv %s3278_s10  ;;  %v1311_v40 = vmul.f32 %v2922_v49, %v1308_v4  ;;  %v1639_v62 = vstv %s3321_s21  ;;  %s2026_s10 = sld [smem:[#allocation10 + $0x3]] }
 0x1ce   : > { %s1774_s21 = sld [smem:[#allocation3]] }
 0x1cf   : > { %v1285_v24 = vpop.permute.xlu1 %1284  ;;  %v1189_v5 = vpop.permute.xlu0 %1188 }
 0x1d0   : > { %v1195_v56 = vadd.f32 %v1189_v5, %v1155_v59 }
 0x1d2   : > { %v1215_v17 = vadd.f32 %v1212_v6, %v1195_v56  ;;  %v1544_v6 = vstv %s2023_s30  ;;  %s2046_s30 = sshll.u32 %s2351_s5, 8 }
 0x1d3   : > { %v1467_v1 = vpop.permute.xlu1 %1466  ;;  %v1287_v39 = vpop.permute.xlu0 %1286 }
 0x1d4   : > { %v1473_v20 = vadd.f32 %v1467_v1, %v1433_v21  ;;  %v3285_v38 = vld [vmem:[#allocation2 + $0x8] sm:$0xff]  ;;  %v3287_v29 = vld [vmem:[#allocation2] sm:$0xff] }
 0x1d5   : > { %v1569_v10 = vmul.f32 %v1567_v61, %v3285_v38  ;;  %v1568_v12 = vmul.f32 %v1567_v61, %v3287_v29  ;;  %v1583_v31 = vmul.f32 %v1581_v9, %v3285_v38  ;;  %v1582_v11 = vmul.f32 %v1581_v9, %v3287_v29  ;;  %v3323_v63 = vld [vmem:[#allocation2 + $0x1] sm:$0xff] }
 0x1d6   : > { %v1521_v52 = vmul.f32 %v3202_v2, %v1473_v20  ;;  %v1214_v2 = vadd.f32 %v1211_v53, %v1194_v26  ;;  %v1618_v23 = vmul.f32 %v1617_v3, %v3323_v63  ;;  %v3341_v19 = vld [vmem:[#allocation2 + $0x2] sm:$0xff] }
 0x1d7   : > { %v1344_v18 = vpop.permute.xlu1 %1343  ;;  %1574 = vrot.lane.b32.xlu1 %v1569_v10, %s2287_s11  ;;  %v1249_v33 = vpop.permute.xlu0 %1248  ;;  %1572 = vrot.lane.b32.xlu0 %v1568_v12, %s2287_s11  ;;  %v1640_v26 = vmul.f32 %v1639_v62, %v3341_v19 }
 0x1d8   : > { %v1526_v34 = vadd.f32 %v3210_v58, %v1521_v52  ;;  %v1254_v51 = vadd.f32 %v1247_v22, %v1214_v2  ;;  %v1293_v58 = vadd.f32 %v1285_v24, %v1253_v57  ;;  %v1604_v22 = vmul.f32 %v1603_v41, %v3323_v63 }
 0x1d9   : > { %v1407_v24 = vstv %s3304_s20  ;;  %v1255_v32 = vadd.f32 %v1249_v33, %v1215_v17  ;;  %v1539_v33 = vstv %s2022_s27  ;;  %s2038_s20 = sld [smem:[#allocation10 + $0xf]] }
 0x1da   : > { %v1529_v44 = vmax.f32 %v1526_v34, 0.0  ;;  %v1294_v42 = vadd.f32 %v1287_v39, %v1254_v51  ;;  %v1312_v27 = vadd.f32 %v1309_v47, %v1293_v58  ;;  %v1408_v61 = vmul.f32 %v2942_v48, %v1407_v24 }
 0x1db   : > { %v1289_v16 = vpop.permute.xlu1 %1288  ;;  %1588 = vrot.lane.b32.xlu1 %v1583_v31, %s2288_s14  ;;  %v1346_v46 = vpop.permute.xlu0 %1345  ;;  %1586 = vrot.lane.b32.xlu0 %v1582_v11, %s2288_s14  ;;  %v1409_v49 = vmul.f32 %v2937_v60, %v1407_v24  ;;  %v1653_v48 = vstv %s3333_s22  ;;  %s295_s22 = sand.u32 1, %s2273_s24  }
 0x1dc   : > { %v1532_v54 = vsel %vm3313_vm10, %v1529_v44, 0.0  ;;  %v1352_v5 = vadd.f32 %v1344_v18, %v1312_v27  ;;  %v1313_v25 = vadd.f32 %v1310_v7, %v1294_v42  ;;  %v1295_v15 = vadd.f32 %v1289_v16, %v1255_v32  ;;  %s1922_s27 = sshll.u32 %s295_s22, 4 }
 0x1dd   : > { %1537 = vst.msk [vmem:[#allocation2 + $0x10] sm:$0x3] %vm1536_vm9, %v1532_v54  ;;  %v1654_v60 = vmul.f32 %v1653_v48, %v3341_v19  ;;  %v1410_v18 = vmul.f32 %v3016_v14, %v1407_v24  ;;  %v1675_v24 = vstv %s2033_s12  ;;  %s297_s12 = scalar_lea.vmem [#allocation12], %s1922_s27 }
 0x1de   : > { %v1353_v30 = vadd.f32 %v1346_v46, %v1313_v25  ;;  %v1314_v20 = vadd.f32 %v1311_v40, %v1295_v15  ;;  %v1689_v25 = vstv %s2034_s13  ;;  %s1807_s13 = sshll.u32 %s297_s12, 4  ;;  %s3427_s13 = int_to_ptr.vmem [resolvable:$true] %s1807_s13 }
 0x1df   : > { %v1386_v0 = vpop.permute.xlu1 %1385  ;;  %v1384_v43 = vpop.permute.xlu0 %1383  ;;  %1608 = vrot.lane.b32.xlu0 %v1604_v22, %s2287_s11  ;;  %s2209_s5 = scalar_lea.vmem %s3427_s13, 256 }
 0x1e0   : > { %v1392_v37 = vadd.f32 %v1384_v43, %v1352_v5  ;;  %v1393_v21 = vadd.f32 %v1386_v0, %v1353_v30  ;;  %p2210_p8 = scmp.ne.s32.totalorder %s3427_s13, %s2209_s5 }
 0x1e2   : > { %v1411_v53 = vadd.f32 %v1408_v61, %v1392_v37  ;;  %v1412_v28 = vadd.f32 %v1409_v49, %v1393_v21  ;;  %v1725_v61 = vstv %s2037_s16  ;;  %v1747_v49 = vstv %s2039_s18  ;;  %s3425_s18 = scalar_lea.hbm %s3475_s6, %s2046_s30  ;;  %p2211_p13 = pnand %p2210_p8, %p3507_p11 }
 0x1e3   : > { %v1443_v13 = vpop.permute.xlu1 %1442  ;;  %v1348_v36 = vpop.permute.xlu0 %1347  ;;  %1622 = vrot.lane.b32.xlu0 %v1618_v23, %s2288_s14 }
 0x1e4   : > { %v3344_v1 = vld [vmem:[#allocation2 + $0x9] sm:$0xff]  ;;  %v1354_v12 = vadd.f32 %v1348_v36, %v1314_v20  ;;  %v1451_v45 = vadd.f32 %v1443_v13, %v1411_v53  ;;  %v1761_v20 = vstv %s2040_s19  ;;  %s3429_s19 = scalar_lea.sflag [#allocation5], %s295_s22  ;;  %p2212_p1 = pneg %p2211_p13 }
 0x1e5   : > { %v1605_v39 = vmul.f32 %v1603_v41, %v3344_v1  ;;  %v1619_v35 = vmul.f32 %v1617_v3, %v3344_v1  ;;  %v3354_v47 = vld [vmem:[#allocation2 + $0xa] sm:$0xff] }
 0x1e6   : > { %v1641_v31 = vmul.f32 %v1639_v62, %v3354_v47  ;;  %v1655_v46 = vmul.f32 %v1653_v48, %v3354_v47  ;;  %v1711_v62 = vstv %s2036_s15 }
 0x1e7   : > { %v1388_v4 = vpop.permute.xlu1 %1387  ;;  %1610 = vrot.lane.b32.xlu1 %v1605_v39, %s2287_s11  ;;  %v1445_v10 = vpop.permute.xlu0 %1444  ;;  %1644 = vrot.lane.b32.xlu0 %v1640_v26, %s2287_s11 }
 0x1e8   : > { %v1394_v52 = vadd.f32 %v1388_v4, %v1354_v12  ;;  %v1452_v9 = vadd.f32 %v1445_v10, %v1412_v28  ;;  %v1561_v10 = vstv %s1560_s29  ;;  %s2289_s29 = smov [#allocation12]  }
 0x1ea   : > { %v1413_v51 = vadd.f32 %v1410_v18, %v1394_v52 }
 0x1eb   : > { %v1485_v57 = vpop.permute.xlu1 %1484  ;;  %1624 = vrot.lane.b32.xlu1 %v1619_v35, %s2288_s14  ;;  %v1483_v59 = vpop.permute.xlu0 %1482  ;;  %1658 = vrot.lane.b32.xlu0 %v1654_v60, %s2288_s14  ;;  %v1563_v35 = vmul.f32 %v1561_v10, %v3285_v38  ;;  %v1562_v60 = vmul.f32 %v1561_v10, %v3287_v29 }
 0x1ec   : > { %v1492_v2 = vadd.f32 %v1485_v57, %v1452_v9  ;;  %v1491_v34 = vadd.f32 %v1483_v59, %v1451_v45  ;;  %v1597_v45 = vstv %s2026_s10  ;;  %s2213_s10 = sshll.u32 %s2289_s29, 4  ;;  %s2214_s10 = int_to_ptr.vmem [resolvable:$false] %s2213_s10 }
 0x1ed   : > { %p2216_p2 = scmp.lt.s32.totalorder %s3427_s13, %s2214_s10 }
 0x1ee   : > { %v1541_v11 = vmul.f32 %v1539_v33, %v1492_v2  ;;  %v1540_v41 = vmul.f32 %v1539_v33, %v1491_v34  ;;  %v1598_v2 = vmul.f32 %v1597_v45, %v3323_v63  ;;  %v1599_v34 = vmul.f32 %v1597_v45, %v3344_v1 }
 0x1ef   : > { %1646 = vrot.lane.b32.xlu1 %v1641_v31, %s2287_s11  ;;  %v1447_v58 = vpop.permute.xlu0 %1446  ;;  %v1487_v56 = vpop.permute.xlu1 %1486 }
 0x1f0   : > { %v1546_v14 = vadd.f32 %v1544_v6, %v1541_v11  ;;  %v1545_v44 = vadd.f32 %v1544_v6, %v1540_v41  ;;  %v1453_v16 = vadd.f32 %v1447_v58, %v1413_v51  ;;  %v1633_v41 = vstv %s2029_s17  ;;  %s2215_s17 = scalar_lea.vmem %s2214_s10, 512 }
 0x1f1   : > { %v1634_v58 = vmul.f32 %v1633_v41, %v3341_v19  ;;  %p2217_p3 = scmp.lt.s32.totalorder %s2215_s17, %s2209_s5 }
 0x1f2   : > { %v1549_v54 = vmax.f32 %v1546_v14, 0.0  ;;  %v1548_v42 = vmax.f32 %v1545_v44, 0.0  ;;  %v1493_v7 = vadd.f32 %v1487_v56, %v1453_v16 }
 0x1f3   : > { %1660 = vrot.lane.b32.xlu1 %v1655_v46, %s2288_s14  ;;  %p2218_p4 = por %p2217_p3, %p2216_p2 }
 0x1f4   : > { %v1552_v22 = vsel %vm3235_vm4, %v1549_v54, 0.0  ;;  %v1551_v27 = vsel %vm3248_vm6, %v1548_v42, 0.0  ;;  %v1542_v17 = vmul.f32 %v1539_v33, %v1493_v7 }
 0x1f5   : > { %1556 = vst.msk [vmem:[#allocation2 + $0x20] sm:$0xff] %vm1533_vm5, %v1552_v22  ;;  %1555 = vst.msk [vmem:[#allocation2 + $0x18] sm:$0xff] %vm1533_vm5, %v1551_v27  ;;  %v1635_v22 = vmul.f32 %v1633_v41, %v3354_v47  ;;  %p2219_p9 = pnand %p2218_p4, %p2212_p1 }
 0x1f6   : > { %v1547_v3 = vadd.f32 %v1544_v6, %v1542_v17 }
 0x1f8   : > { %v1550_v0 = vmax.f32 %v1547_v3, 0.0 }
 0x1fa   : > { %v1553_v43 = vsel %vm3313_vm10, %v1550_v0, 0.0 }
 0x1fb   : > { %1557 = vst.msk [vmem:[#allocation2 + $0x28] sm:$0x3] %vm1536_vm9, %v1553_v43 }
 0x1fc   : > { %v3372_v8 = vld [vmem:[#allocation2 + $0x20] sm:$0xff]  ;;  %v3374_v5 = vld [vmem:[#allocation2 + $0x18] sm:$0xff] }
 0x1fd   : > { %v1677_v50 = vmul.f32 %v1675_v24, %v3372_v8  ;;  %v1676_v32 = vmul.f32 %v1675_v24, %v3374_v5  ;;  %v1691_v55 = vmul.f32 %v1689_v25, %v3372_v8  ;;  %v1690_v40 = vmul.f32 %v1689_v25, %v3374_v5  ;;  %v3384_v15 = vld [vmem:[#allocation2 + $0x19] sm:$0xff] }
 0x1fe   : > { %v1712_v37 = vmul.f32 %v1711_v62, %v3384_v15  ;;  %v1726_v36 = vmul.f32 %v1725_v61, %v3384_v15  ;;  %v3396_v39 = vld [vmem:[#allocation2 + $0x1a] sm:$0xff] }
 0x1ff   : > { %1682 = vrot.lane.b32.xlu1 %v1677_v50, %s2287_s11  ;;  %1680 = vrot.lane.b32.xlu0 %v1676_v32, %s2287_s11  ;;  %v1748_v53 = vmul.f32 %v1747_v49, %v3396_v39  ;;  %v1762_v4 = vmul.f32 %v1761_v20, %v3396_v39 }
 0x202   : > { %v3382_v23 = vld [vmem:[#allocation2 + $0x21] sm:$0xff] }
 0x203   : > { %1696 = vrot.lane.b32.xlu1 %v1691_v55, %s2288_s14  ;;  %1694 = vrot.lane.b32.xlu0 %v1690_v40, %s2288_s14  ;;  %v1713_v30 = vmul.f32 %v1711_v62, %v3382_v23  ;;  %v1727_v13 = vmul.f32 %v1725_v61, %v3382_v23  ;;  %v3394_v21 = vld [vmem:[#allocation2 + $0x22] sm:$0xff] }
 0x204   : > { %v1749_v26 = vmul.f32 %v1747_v49, %v3394_v21  ;;  %v1763_v48 = vmul.f32 %v1761_v20, %v3394_v21  ;;  %v1741_v20 = vstv %s2038_s20 }
 0x205   : > { %v1742_v45 = vmul.f32 %v1741_v20, %v3396_v39 }
 0x207   : > { %1718 = vrot.lane.b32.xlu1 %v1713_v30, %s2287_s11  ;;  %1716 = vrot.lane.b32.xlu0 %v1712_v37, %s2287_s11 }
 0x20b   : > { %1732 = vrot.lane.b32.xlu1 %v1727_v13, %s2288_s14  ;;  %1730 = vrot.lane.b32.xlu0 %v1726_v36, %s2288_s14 }
 0x20f   : > { %1754 = vrot.lane.b32.xlu1 %v1749_v26, %s2287_s11  ;;  %1752 = vrot.lane.b32.xlu0 %v1748_v53, %s2287_s11  ;;  %s2032_s11 = sld [smem:[#allocation10 + $0x9]] }
 0x213   : > { %1768 = vrot.lane.b32.xlu1 %v1763_v48, %s2288_s14  ;;  %1766 = vrot.lane.b32.xlu0 %v1762_v4, %s2288_s14  ;;  %s2035_s14 = sld [smem:[#allocation10 + $0xc]] }
 0x215   : > { %v1669_v16 = vstv %s2032_s11 }
 0x216   : > { %v1670_v27 = vmul.f32 %v1669_v16, %v3374_v5  ;;  %v1671_v50 = vmul.f32 %v1669_v16, %v3372_v8 }
 0x219   : > { %v1705_v40 = vstv %s2035_s14 }
 0x21a   : > { %v1707_v13 = vmul.f32 %v1705_v40, %v3382_v23  ;;  %v1706_v36 = vmul.f32 %v1705_v40, %v3384_v15 }
 0x249   : > { %v1575_v12 = vpop.permute.xlu1 %1574  ;;  %v1573_v28 = vpop.permute.xlu0 %1572 }
 0x24a   : > { %v1579_v52 = vadd.f32 %v1575_v12, %v1563_v35  ;;  %v1578_v9 = vadd.f32 %v1573_v28, %v1562_v60  ;;  %v1743_v60 = vmul.f32 %v1741_v20, %v3394_v21 }
 0x24d   : > { %v1589_v18 = vpop.permute.xlu1 %1588  ;;  %v1587_v33 = vpop.permute.xlu0 %1586 }
 0x24e   : > { %v1593_v57 = vadd.f32 %v1589_v18, %v1579_v52  ;;  %v1592_v59 = vadd.f32 %v1587_v33, %v1578_v9 }
 0x250   : > { %v1600_v6 = vadd.f32 %v1598_v2, %v1592_v59  ;;  %v1601_v31 = vadd.f32 %v1599_v34, %v1593_v57  ;;  %v1775_v57 = vstv %s1774_s21 }
 0x251   : > { %v1609_v11 = vpop.permute.xlu0 %1608 }
 0x252   : > { %v1614_v38 = vadd.f32 %v1609_v11, %v1600_v6 }
 0x255   : > { %v1623_v51 = vpop.permute.xlu0 %1622 }
 0x256   : > { %v1628_v29 = vadd.f32 %v1623_v51, %v1614_v38 }
 0x258   : > { %v1636_v56 = vadd.f32 %v1634_v58, %v1628_v29 }
 0x259   : > { %v1611_v14 = vpop.permute.xlu1 %1610  ;;  %v1645_v44 = vpop.permute.xlu0 %1644 }
 0x25a   : > { %v1615_v46 = vadd.f32 %v1611_v14, %v1601_v31  ;;  %v1650_v54 = vadd.f32 %v1645_v44, %v1636_v56 }
 0x25d   : > { %v1625_v42 = vpop.permute.xlu1 %1624  ;;  %v1659_v63 = vpop.permute.xlu0 %1658 }
 0x25e   : > { %v1629_v7 = vadd.f32 %v1625_v42, %v1615_v46  ;;  %v1664_v1 = vadd.f32 %v1659_v63, %v1650_v54 }
 0x260   : > { %v1637_v17 = vadd.f32 %v1635_v22, %v1629_v7  ;;  %v1672_v3 = vadd.f32 %v1670_v27, %v1664_v1 }
 0x261   : > { %v1647_v0 = vpop.permute.xlu1 %1646 }
 0x262   : > { %v1651_v43 = vadd.f32 %v1647_v0, %v1637_v17 }
 0x265   : > { %v1661_v24 = vpop.permute.xlu1 %1660 }
 0x266   : > { %v1665_v19 = vadd.f32 %v1661_v24, %v1651_v43 }
 0x268   : > { %v1673_v32 = vadd.f32 %v1671_v50, %v1665_v19 }
 0x271   : > { %v1683_v25 = vpop.permute.xlu1 %1682  ;;  %v1681_v55 = vpop.permute.xlu0 %1680 }
 0x272   : > { %v1687_v62 = vadd.f32 %v1683_v25, %v1673_v32  ;;  %v1686_v30 = vadd.f32 %v1681_v55, %v1672_v3 }
 0x275   : > { %v1697_v37 = vpop.permute.xlu1 %1696  ;;  %v1695_v47 = vpop.permute.xlu0 %1694 }
 0x276   : > { %v1701_v61 = vadd.f32 %v1697_v37, %v1687_v62  ;;  %v1700_v5 = vadd.f32 %v1695_v47, %v1686_v30 }
 0x278   : > { %v1709_v49 = vadd.f32 %v1707_v13, %v1701_v61  ;;  %v1708_v26 = vadd.f32 %v1706_v36, %v1700_v5 }
 0x279   : > { %v1719_v53 = vpop.permute.xlu1 %1718  ;;  %v1717_v8 = vpop.permute.xlu0 %1716 }
 0x27a   : > { %v1723_v48 = vadd.f32 %v1719_v53, %v1709_v49  ;;  %v1722_v4 = vadd.f32 %v1717_v8, %v1708_v26 }
 0x27d   : > { %v1733_v10 = vpop.permute.xlu1 %1732  ;;  %v1731_v12 = vpop.permute.xlu0 %1730 }
 0x27e   : > { %v1737_v28 = vadd.f32 %v1733_v10, %v1723_v48  ;;  %v1736_v35 = vadd.f32 %v1731_v12, %v1722_v4 }
 0x280   : > { %v1745_v52 = vadd.f32 %v1743_v60, %v1737_v28  ;;  %v1744_v23 = vadd.f32 %v1742_v45, %v1736_v35 }
 0x281   : > { %v1755_v9 = vpop.permute.xlu1 %1754  ;;  %v1753_v15 = vpop.permute.xlu0 %1752 }
 0x282   : > { %v1759_v18 = vadd.f32 %v1755_v9, %v1745_v52  ;;  %v1758_v33 = vadd.f32 %v1753_v15, %v1744_v23 }
 0x285   : > { %v1769_v59 = vpop.permute.xlu1 %1768  ;;  %v1767_v2 = vpop.permute.xlu0 %1766 }
 0x286   : > { %v1773_v34 = vadd.f32 %v1769_v59, %v1759_v18  ;;  %v1772_v6 = vadd.f32 %v1767_v2, %v1758_v33 }
 0x288   : > { %v1777_v31 = vadd.f32 %v1775_v57, %v1773_v34  ;;  %v1776_v11 = vadd.f32 %v1775_v57, %v1772_v6 }
 0x28a   : > { %v1779_v41 = vsub.f32 0.0, %v1777_v31  ;;  %v1778_v38 = vsub.f32 0.0, %v1776_v11 }
 0x28c   : > { %v1782_v21 = vmul.f32 1.442695, %v1779_v41  ;;  %v1780_v51 = vmul.f32 1.442695, %v1778_v38 }
 0x28e   : > { %2132 = vpow2.f32 %v1782_v21 }
 0x28f   : > { %2134 = vpow2.f32 %v1780_v51 }
 0x29b   : > { %v2133_v39 = vpop.eup %2132 }
 0x29c   : > { %v2135_v29 = vpop.eup %2134  ;;  %v1785_v58 = vadd.f32 1.0, %v2133_v39 }
 0x29d   : > { %v1784_v56 = vadd.f32 1.0, %v2135_v29 }
 0x29e   : > { %2136 = vrcp.f32 %v1785_v58 }
 0x29f   : > { %2138 = vrcp.f32 %v1784_v56 }
 0x2ab   : > { %v2137_v14 = vpop.eup %2136 }
 0x2ac   : > { %v2139_v44 = vpop.eup %2138  ;;  %1792 = vst.msk [vmem:[%s297_s12 + $0x8] sm:$0xff] %vm1790_vm11, %v2137_v14 }
 0x2ad   : > { %1791 = vst.msk [vmem:[%s297_s12] sm:$0xff] %vm1790_vm11, %v2139_v44 }
 0x2ae   : > { %2222 = shalt.err (!%p2219_p9)
}
 0x2af   : > { %s2223_s11 = scalar_lea.hbm %s3425_s18, 256  ;;  %s2227_s21 = scalar_lea.hbm %s3475_s6, 512 }
 0x2b0   : > { %p2224_p7 = scmp.ne.s32.totalorder %s3425_s18, %s2223_s11  ;;  %p2228_p6 = scmp.lt.s32.totalorder %s3425_s18, %s3475_s6 }
 0x2b1   : > { %p2229_p12 = scmp.lt.s32.totalorder %s2227_s21, %s2223_s11 }
 0x2b2   : > { %p2225_p0 = pnand %p2224_p7, %p3507_p11 }
 0x2b3   : > { %p2230_p10 = por %p2229_p12, %p2228_p6 }
 0x2b4   : > { %p2226_p5 = pneg %p2225_p0 }
 0x2b6   : > { %p2231_p8 = pnand %p2230_p10, %p2226_p5 }
 0x2b8   : > { %2234 = shalt.err (!%p2231_p8)
}
 0x2b9   : > { %s2290_s30 = smov 128   ;;  %s2291_s12 = smov 8  }
 0x2ba   : > { %2064 = dma.vmem_to_hbm [thread:$0]  (%p3507_p11), %s3427_s13, 256, %s3425_s18, %s3429_s19, %s2290_s30, %s2290_s30, %s2291_s12  }
 0x2bb PF: > { %p2091_p13 = scmp.ge.s32.totalorder %s2281_s26, 2  ;;  %s1822_s15 = sand.u32 1, %s2269_s23  }
 0x2bc   : > { %p3508_p1 = scmp.ne.s32.totalorder %s3483_s9, 0  ;;  %s1823_s16 = scalar_lea.sflag [#allocation5], %s1822_s15 }
 0x2be   : > { %p2080_p2 = pnand %p2091_p13, %p3508_p1 }
 0x2c0   : > { %p2081_p3 = pneg %p2080_p2 }
 0x2c2   : > { %2264 = dma.done.wait (%p2081_p3), %s1823_s16, 256  }
 0x2c3   : > { %2266 = vsyncadd (%p2081_p3), %s1823_s16, 4294967040  ;;  %p20_p4 = scmp.ge.s32.totalorder %s2355_s28, 4   ;;  %s3509_s23 = smov %s2273_s24 }
 0x2c4   : > { %s3510_s24 = smov %s2277_s25  ;;  %s3511_s25 = smov %s2366_s7 }
 0x2c5   : > { %s3512_s26 = smov %s2355_s28  ;;  %22 = sbr.rel (!%p20_p4) target bundleno = 8 (0x8), region = 100 }
 0x2ca   :  { %1828 = vsyncpa [#allocation5], 1 }
 0x2cb   :  { %1830 = vsyncpa [#allocation5 + $0x1], 1 }
 0x2cc   :  { %1831 = vsyncpa [#allocation6], 1 }
 0x2cd   :  { %1833 = vsyncpa [#allocation6 + $0x1], 1 }
 0x2ce   :  { %1834 = vsyncpa [#allocation8], 1 }
 0x2cf   :  { %1835 = vsyncpa [#allocation11], 1 }

</bundles_post_ra>
